<compile_context>
chip_gen: v5e
topology: v5e:2x2
jax: 0.10.0
libtpu: 0.0.40
codegen_flags: <defaults>
</compile_context>

<pallas_src>
import functools

import jax
import jax.numpy as jnp
from jax import lax
from jax.experimental import pallas as pl
from jax.experimental.pallas import tpu as pltpu


# ----------------------------------------------------------------------------
# Prologue kernel: fused input projection, hoisted out of the recurrence.
#   x2d (rows_tile, E) bf16 @ w_ih (E, 4H) bf16 + b (1, 4H) f32 -> (rows_tile, 4H) f32
# Rows are tiled over a "parallel" grid; w_ih / b are whole-array VMEM residents.
# ----------------------------------------------------------------------------
def _input_proj_kernel(x_ref, w_ref, b_ref, o_ref):
    o_ref[...] = (
        jnp.dot(x_ref[...], w_ref[...], preferred_element_type=jnp.float32)
        + b_ref[...]
    )


# ----------------------------------------------------------------------------
# Recurrent kernel: one grid step == one chunk of tc timesteps (time-major).
#   xp_ref : (tc, B, 4H) f32   precomputed x-projection (bias folded in)
#   whh_ref: (H, 4H)     bf16  fused hidden->gate weights, gate order [i,f,g,o]
#   h0/c0  : (B, H)      f32   initial state (whole-array VMEM residents)
#   out_ref: (tc, B, H)  f32   hidden outputs for this chunk
#   hn/cn  : (B, H)      f32   running state (resident output blocks; also h_n/c_n)
# ----------------------------------------------------------------------------
def _lstm_chunk_kernel(xp_ref, whh_ref, h0_ref, c0_ref,
                       out_ref, hn_ref, cn_ref,
                       *, tc, t_actual, mask_tail, unroll):
    chunk = pl.program_id(0)

    @pl.when(chunk == 0)
    def _():
        hn_ref[...] = h0_ref[...]
        cn_ref[...] = c0_ref[...]

    H = hn_ref.shape[-1]
    w_hh = whh_ref[...]  # (H, 4H) bf16, loop-invariant: load once

    def step(t, carry):
        h, c = carry
        # One fused bf16 MXU dot per step (x-projection + bias precomputed),
        # f32 accumulation; leading-axis xp_ref[t] is a plain offset load.
        gates = xp_ref[t] + jnp.dot(
            h.astype(jnp.bfloat16), w_hh, preferred_element_type=jnp.float32
        )  # (B, 4H) f32
        # Minimal EUP work: sigmoid over the [i|f] slab and [o], tanh over [g].
        if_act = jax.nn.sigmoid(gates[:, : 2 * H])
        g_act = jnp.tanh(gates[:, 2 * H:3 * H])
        o_act = jax.nn.sigmoid(gates[:, 3 * H:])
        c_new = if_act[:, H:] * c + if_act[:, :H] * g_act   # f*c + i*g
        h_new = o_act * jnp.tanh(c_new)
        # NOTE: lane-dense only when H % 128 == 0 (production); at toy H=32
        # this is a masked partial store, acceptable at these sizes.
        out_ref[t] = h_new
        if mask_tail:
            # Padded tail timesteps must not advance the carried state.
            valid = (chunk * tc + t) < t_actual
            h_new = jnp.where(valid, h_new, h)
            c_new = jnp.where(valid, c_new, c)
        return h_new, c_new

    h, c = lax.fori_loop(0, tc, step, (hn_ref[...], cn_ref[...]), unroll=unroll)
    hn_ref[...] = h
    cn_ref[...] = c


# ----------------------------------------------------------------------------
# Shape / tiling helpers
# ----------------------------------------------------------------------------
def _round_up(x, m):
    return ((x + m - 1) // m) * m


def _choose_row_tile(rows):
    for cand in (512, 256, 128, 64, 32, 16, 8):
        if rows % cand == 0:
            return cand
    return rows  # rows is always a multiple of 8 here, so this is unreachable


def _choose_tc(T, B_pad, H, requested=None):
    """Timestep chunk sized against a conservative VMEM pipelining budget."""
    # Double-buffered xp (4H f32) + out (H f32) chunk bytes, per timestep.
    per_step = 2 * B_pad * (4 * H + H) * 4
    budget = 8 << 20  # fits comfortably inside every chip's scoped VMEM
    tc_max = max(1, budget // per_step)
    tc = 8 if requested is None else int(requested)
    return max(1, min(tc, tc_max, T))


# ----------------------------------------------------------------------------
# Wrapper mirroring Decoder.forward(caption, states) -> (output, (h_n, c_n))
# ----------------------------------------------------------------------------
@functools.partial(jax.jit, static_argnames=("tc",))
def decoder_forward(caption, params, states=None, tc=None):
    """caption: (B, T, E) f32.  params: w_ih (E,4H) bf16, w_hh (H,4H) bf16, b (1,4H) f32."""
    B, T, E = caption.shape
    w_ih = params["w_ih"].astype(jnp.bfloat16)
    w_hh = params["w_hh"].astype(jnp.bfloat16)
    b = params["b"].astype(jnp.float32)
    H = w_hh.shape[0]

    caption = caption.astype(jnp.float32)

    if states is None:
        h0 = jnp.zeros((B, H), jnp.float32)
        c0 = jnp.zeros((B, H), jnp.float32)
    else:
        h0 = states[0].reshape(B, H).astype(jnp.float32)
        c0 = states[1].reshape(B, H).astype(jnp.float32)

    if T == 0:  # degenerate-sequence guard
        return jnp.zeros((B, 0, H), jnp.float32), (h0[None], c0[None])

    # Pad batch to a multiple of 8 sublanes (padded rows computed then dropped),
    # pad T to a multiple of tc (tail masked in the state update).
    B_pad = _round_up(B, 8)
    tc = _choose_tc(T, B_pad, H, requested=tc)
    T_pad = _round_up(T, tc)
    n_chunks = T_pad // tc
    mask_tail = T_pad != T
    unroll = min(tc, 8)  # bounded unroll: LLO visibility without spill cliff

    # ---- prologue: hoisted fused input projection (tiled bf16 MXU matmul) ----
    cap = caption
    if B_pad != B or T_pad != T:
        cap = jnp.pad(caption, ((0, B_pad - B), (0, T_pad - T), (0, 0)))
    cap = cap.astype(jnp.bfloat16)
    x_tm = jnp.transpose(cap, (1, 0, 2)).reshape(T_pad * B_pad, E)  # time-major rows

    rows = T_pad * B_pad
    tile_rows = _choose_row_tile(rows)
    x_proj = pl.pallas_call(
        _input_proj_kernel,
        out_shape=jax.ShapeDtypeStruct((rows, 4 * H), jnp.float32),
        grid_spec=pltpu.PrefetchScalarGridSpec(
            num_scalar_prefetch=0,
            grid=(rows // tile_rows,),
            in_specs=[
                pl.BlockSpec((tile_rows, E), lambda i: (i, 0)),          # x rows
                pl.BlockSpec(memory_space=pltpu.MemorySpace.VMEM),       # w_ih (whole, single-buffered)
                pl.BlockSpec(memory_space=pltpu.MemorySpace.VMEM),       # fused bias
            ],
            out_specs=pl.BlockSpec((tile_rows, 4 * H), lambda i: (i, 0)),
        ),
        compiler_params=pltpu.CompilerParams(
            dimension_semantics=("parallel",)),
    )(x_tm, w_ih, b)
    x_proj = x_proj.reshape(T_pad, B_pad, 4 * H)

    if B_pad != B:
        h0p = jnp.zeros((B_pad, H), jnp.float32).at[:B].set(h0)
        c0p = jnp.zeros((B_pad, H), jnp.float32).at[:B].set(c0)
    else:
        h0p, c0p = h0, c0

    # Explicit VMEM limit derived from the actual buffer footprint (v7x-safe cap).
    vmem_est = (2 * tc * B_pad * 4 * H * 4   # xp chunk, double-buffered
                + 2 * tc * B_pad * H * 4     # out chunk, double-buffered
                + H * 4 * H * 2              # w_hh bf16, single-buffered
                + 2 * B_pad * H * 4          # h0, c0, single-buffered
                + 4 * B_pad * H * 4)         # hn, cn resident output blocks
    vmem_limit = int(min(max(2 * vmem_est + (1 << 20), 32 << 20), 64 << 20))

    kernel = functools.partial(
        _lstm_chunk_kernel, tc=tc, t_actual=T, mask_tail=mask_tail, unroll=unroll)

    # ---- recurrence: sequential grid over chunks of tc timesteps ----
    # TODO(synk): for v7x with large B, add a leading "parallel" batch grid axis
    #             (independent chains) to use the 2nd TensorCore.
    out_tm, h_n, c_n = pl.pallas_call(
        kernel,
        out_shape=(
            jax.ShapeDtypeStruct((T_pad, B_pad, H), jnp.float32),
            jax.ShapeDtypeStruct((B_pad, H), jnp.float32),
            jax.ShapeDtypeStruct((B_pad, H), jnp.float32),
        ),
        grid_spec=pltpu.PrefetchScalarGridSpec(
            num_scalar_prefetch=0,
            grid=(n_chunks,),
            in_specs=[
                pl.BlockSpec((tc, B_pad, 4 * H), lambda i: (i, 0, 0)),   # xp chunk
                pl.BlockSpec(memory_space=pltpu.MemorySpace.VMEM),       # w_hh (single-buffered)
                pl.BlockSpec(memory_space=pltpu.MemorySpace.VMEM),       # h0
                pl.BlockSpec(memory_space=pltpu.MemorySpace.VMEM),       # c0
            ],
            out_specs=[
                pl.BlockSpec((tc, B_pad, H), lambda i: (i, 0, 0)),       # output chunk
                pl.BlockSpec((B_pad, H), lambda i: (0, 0)),              # h state (resident)
                pl.BlockSpec((B_pad, H), lambda i: (0, 0)),              # c state (resident)
            ],
        ),
        compiler_params=pltpu.CompilerParams(
            dimension_semantics=("arbitrary",),   # time is a true recurrence
            vmem_limit_bytes=vmem_limit,
        ),
    )(x_proj, w_hh, h0p, c0p)

    out = jnp.transpose(out_tm[:T, :B, :], (1, 0, 2))  # back to (B, T, H)
    return out, (h_n[:B][None], c_n[:B][None])


def init_decoder_params(key, embed_size, hidden_size):
    """Fused-layout init matching PyTorch LSTM semantics.

    PyTorch stores weight_ih_l0 (4H,E), weight_hh_l0 (4H,H), bias_ih/hh (4H,),
    gate order [i, f, g, o], init U(-1/sqrt(H), 1/sqrt(H)). We keep them
    pre-transposed / pre-fused and the matmul weights in bf16 (MXU operands):
      w_ih: (E, 4H) bf16, w_hh: (H, 4H) bf16, b: (1, 4H) f32 where b = b_ih + b_hh.
    """
    k1, k2, k3, k4 = jax.random.split(key, 4)
    bound = 1.0 / (hidden_size ** 0.5)
    u = lambda k, shape: jax.random.uniform(k, shape, jnp.float32, -bound, bound)
    w_ih = u(k1, (embed_size, 4 * hidden_size))
    w_hh = u(k2, (hidden_size, 4 * hidden_size))
    b_ih = u(k3, (1, 4 * hidden_size))
    b_hh = u(k4, (1, 4 * hidden_size))
    return {
        "w_ih": w_ih.astype(jnp.bfloat16),
        "w_hh": w_hh.astype(jnp.bfloat16),
        "b": b_ih + b_hh,
    }


def _reference_lstm(caption, params):
    """Pure-JAX reference (lax.scan) mirroring the kernel's mixed precision."""
    w_ih = params["w_ih"].astype(jnp.bfloat16)
    w_hh = params["w_hh"].astype(jnp.bfloat16)
    b = params["b"].astype(jnp.float32)
    B, T, E = caption.shape
    H = w_hh.shape[0]

    gx = jnp.dot(caption.astype(jnp.bfloat16).reshape(B * T, E), w_ih,
                 preferred_element_type=jnp.float32) + b
    gx = gx.reshape(B, T, 4 * H)

    def step(carry, g_t):
        h, c = carry
        gates = g_t + jnp.dot(h.astype(jnp.bfloat16), w_hh,
                              preferred_element_type=jnp.float32)
        i = jax.nn.sigmoid(gates[:, 0 * H:1 * H])
        f = jax.nn.sigmoid(gates[:, 1 * H:2 * H])
        g = jnp.tanh(gates[:, 2 * H:3 * H])
        o = jax.nn.sigmoid(gates[:, 3 * H:4 * H])
        c_new = f * c + i * g
        h_new = o * jnp.tanh(c_new)
        return (h_new, c_new), h_new

    h0 = jnp.zeros((B, H), jnp.float32)
    c0 = jnp.zeros((B, H), jnp.float32)
    (h_n, c_n), outs = lax.scan(step, (h0, c0), jnp.transpose(gx, (1, 0, 2)))
    return jnp.transpose(outs, (1, 0, 2)), (h_n[None], c_n[None])


if __name__ == "__main__":
    # Small shapes consistent with Decoder(embed_size, hidden_size, vocab_size).
    # TODO(synk): the ResNet-152 encoder, embedding lookup, vocab MLP and
    #             pack_padded_sequence of Encoder2Decoder are out of kernel scope;
    #             only the Decoder LSTM forward is implemented here.
    B, T = 2, 16
    embed_size, hidden_size, vocab_size = 32, 32, 100  # vocab unused in forward

    key = jax.random.PRNGKey(0)
    k_param, k_in = jax.random.split(key)
    params = init_decoder_params(k_param, embed_size, hidden_size)
    caption = jax.random.normal(k_in, (B, T, embed_size), jnp.float32)

    out, (h_n, c_n) = decoder_forward(caption, params, states=None)
    jax.block_until_ready((out, h_n, c_n))

    # Silent correctness check against the mixed-precision pure-JAX reference.
    ref_out, (ref_h, ref_c) = _reference_lstm(caption, params)
    assert out.shape == (B, T, hidden_size)
    assert h_n.shape == (1, B, hidden_size) and c_n.shape == (1, B, hidden_size)
    assert jnp.allclose(out, ref_out, atol=5e-3, rtol=5e-3)
    assert jnp.allclose(h_n, ref_h, atol=5e-3, rtol=5e-3)
    assert jnp.allclose(c_n, ref_c, atol=5e-3, rtol=5e-3)

    print("KERNEL_OK")
</pallas_src>

<mosaic_0001>
module attributes {stable_mosaic.version = 11 : i64} {
  func.func @_input_proj_kernel(%arg0: i32, %arg1: memref<128x32xbf16, #tpu.memory_space<vmem>>, %arg2: memref<32x128xbf16, #tpu.memory_space<vmem>>, %arg3: memref<1x128xf32, #tpu.memory_space<vmem>>, %arg4: memref<128x128xf32, #tpu.memory_space<vmem>>) attributes {dimension_semantics = [#tpu.dimension_semantics<parallel>], iteration_bounds = array<i64: 1>, scalar_prefetch = 0 : i64, scratch_operands = 0 : i64, tpu.core_type = #tpu.core_type<tc>, window_params = [{transform_indices = @transform_0, window_bounds = array<i64: 128, 32>}, {pipeline_mode = #tpu.pipeline_mode<synchronous>, transform_indices = @transform_1, window_bounds = array<i64: 32, 128>}, {pipeline_mode = #tpu.pipeline_mode<synchronous>, transform_indices = @transform_2, window_bounds = array<i64: 1, 128>}, {transform_indices = @transform_3, window_bounds = array<i64: 128, 128>}]} {
    %c0 = arith.constant 0 : index
    %c0_0 = arith.constant 0 : index
    %0 = vector.load %arg1[%c0, %c0_0] : memref<128x32xbf16, #tpu.memory_space<vmem>>, vector<128x32xbf16>
    %c0_1 = arith.constant 0 : index
    %c0_2 = arith.constant 0 : index
    %1 = vector.load %arg2[%c0_1, %c0_2] : memref<32x128xbf16, #tpu.memory_space<vmem>>, vector<32x128xbf16>
    %cst = arith.constant dense<0.000000e+00> : vector<128x128xf32>
    %2 = tpu.matmul %0, %1, %cst {dimension_numbers = #tpu.dot_dimension_numbers<[1], [0], [0], [1], [0, 0, 1, 1], [], []>} : vector<128x32xbf16>, vector<32x128xbf16>, vector<128x128xf32> -> vector<128x128xf32>
    %c0_3 = arith.constant 0 : index
    %c0_4 = arith.constant 0 : index
    %3 = vector.load %arg3[%c0_3, %c0_4] : memref<1x128xf32, #tpu.memory_space<vmem>>, vector<1x128xf32>
    %4 = vector.broadcast %3 : vector<1x128xf32> to vector<128x128xf32>
    %5 = arith.addf %2, %4 : vector<128x128xf32>
    %c0_5 = arith.constant 0 : index
    %c0_6 = arith.constant 0 : index
    %6 = vector.load %arg4[%c0_5, %c0_6] : memref<128x128xf32, #tpu.memory_space<vmem>>, vector<128x128xf32>
    tpu.vector_store %arg4[%c0_5, %c0_6], %5 {strides = array<i32>} : memref<128x128xf32, #tpu.memory_space<vmem>>, vector<128x128xf32>,
    return
  }
  func.func @transform_0(%arg0: i32) -> (i32, i32) {
    %c0_i32 = arith.constant 0 : i32
    %c0_i32_0 = arith.constant 0 : i32
    return %arg0, %c0_i32 : i32, i32
  }
  func.func @transform_1(%arg0: i32) -> (i32, i32) {
    %c0_i32 = arith.constant 0 : i32
    %c0_i32_0 = arith.constant 0 : i32
    %c0_i32_1 = arith.constant 0 : i32
    return %c0_i32, %c0_i32_0 : i32, i32
  }
  func.func @transform_2(%arg0: i32) -> (i32, i32) {
    %c0_i32 = arith.constant 0 : i32
    %c0_i32_0 = arith.constant 0 : i32
    %c0_i32_1 = arith.constant 0 : i32
    return %c0_i32, %c0_i32_0 : i32, i32
  }
  func.func @transform_3(%arg0: i32) -> (i32, i32) {
    %c0_i32 = arith.constant 0 : i32
    %c0_i32_0 = arith.constant 0 : i32
    return %arg0, %c0_i32 : i32, i32
  }
}

module attributes {stable_mosaic.version = 11 : i64} {
  func.func @_lstm_chunk_kernel(%arg0: i32, %arg1: memref<8x8x128xf32, #tpu.memory_space<vmem>>, %arg2: memref<32x128xbf16, #tpu.memory_space<vmem>>, %arg3: memref<8x32xf32, #tpu.memory_space<vmem>>, %arg4: memref<8x32xf32, #tpu.memory_space<vmem>>, %arg5: memref<8x8x32xf32, #tpu.memory_space<vmem>>, %arg6: memref<8x32xf32, #tpu.memory_space<vmem>>, %arg7: memref<8x32xf32, #tpu.memory_space<vmem>>) attributes {dimension_semantics = [#tpu.dimension_semantics<arbitrary>], iteration_bounds = array<i64: 2>, scalar_prefetch = 0 : i64, scratch_operands = 0 : i64, tpu.core_type = #tpu.core_type<tc>, window_params = [{transform_indices = @transform_0, window_bounds = array<i64: 8, 8, 128>}, {pipeline_mode = #tpu.pipeline_mode<synchronous>, transform_indices = @transform_1, window_bounds = array<i64: 32, 128>}, {pipeline_mode = #tpu.pipeline_mode<synchronous>, transform_indices = @transform_2, window_bounds = array<i64: 8, 32>}, {pipeline_mode = #tpu.pipeline_mode<synchronous>, transform_indices = @transform_3, window_bounds = array<i64: 8, 32>}, {transform_indices = @transform_4, window_bounds = array<i64: 8, 8, 32>}, {pipeline_mode = #tpu.pipeline_mode<synchronous>, transform_indices = @transform_5, window_bounds = array<i64: 8, 32>}, {pipeline_mode = #tpu.pipeline_mode<synchronous>, transform_indices = @transform_6, window_bounds = array<i64: 8, 32>}]} {
    %c0_i32 = arith.constant 0 : i32
    %0 = arith.cmpi eq, %arg0, %c0_i32 : i32
    %1 = arith.extui %0 : i1 to i32
    %c0_i32_0 = arith.constant 0 : i32
    %2 = arith.cmpi ne, %1, %c0_i32_0 : i32
    scf.if %2 {
      %c0_66 = arith.constant 0 : index
      %c0_67 = arith.constant 0 : index
      %256 = vector.load %arg3[%c0_66, %c0_67] : memref<8x32xf32, #tpu.memory_space<vmem>>, vector<8x32xf32>
      %c0_68 = arith.constant 0 : index
      %c0_69 = arith.constant 0 : index
      %257 = vector.load %arg6[%c0_68, %c0_69] : memref<8x32xf32, #tpu.memory_space<vmem>>, vector<8x32xf32>
      tpu.vector_store %arg6[%c0_68, %c0_69], %256 {strides = array<i32>} : memref<8x32xf32, #tpu.memory_space<vmem>>, vector<8x32xf32>,
      %c0_70 = arith.constant 0 : index
      %c0_71 = arith.constant 0 : index
      %258 = vector.load %arg4[%c0_70, %c0_71] : memref<8x32xf32, #tpu.memory_space<vmem>>, vector<8x32xf32>
      %c0_72 = arith.constant 0 : index
      %c0_73 = arith.constant 0 : index
      %259 = vector.load %arg7[%c0_72, %c0_73] : memref<8x32xf32, #tpu.memory_space<vmem>>, vector<8x32xf32>
      tpu.vector_store %arg7[%c0_72, %c0_73], %258 {strides = array<i32>} : memref<8x32xf32, #tpu.memory_space<vmem>>, vector<8x32xf32>,
    } else {
    }
    %c0 = arith.constant 0 : index
    %c0_1 = arith.constant 0 : index
    %3 = vector.load %arg2[%c0, %c0_1] : memref<32x128xbf16, #tpu.memory_space<vmem>>, vector<32x128xbf16>
    %c0_2 = arith.constant 0 : index
    %c0_3 = arith.constant 0 : index
    %4 = vector.load %arg6[%c0_2, %c0_3] : memref<8x32xf32, #tpu.memory_space<vmem>>, vector<8x32xf32>
    %c0_4 = arith.constant 0 : index
    %c0_5 = arith.constant 0 : index
    %5 = vector.load %arg7[%c0_4, %c0_5] : memref<8x32xf32, #tpu.memory_space<vmem>>, vector<8x32xf32>
    %c0_i32_6 = arith.constant 0 : i32
    %6 = arith.index_cast %c0_i32_6 : i32 to index
    %c0_7 = arith.constant 0 : index
    %c0_8 = arith.constant 0 : index
    %7 = vector.load %arg1[%6, %c0_7, %c0_8] : memref<8x8x128xf32, #tpu.memory_space<vmem>>, vector<1x8x128xf32>
    %8 = vector.shape_cast %7 : vector<1x8x128xf32> to vector<8x128xf32>
    %9 = arith.truncf %4 : vector<8x32xf32> to vector<8x32xbf16>
    %cst = arith.constant dense<0.000000e+00> : vector<8x128xf32>
    %10 = tpu.matmul %9, %3, %cst {dimension_numbers = #tpu.dot_dimension_numbers<[1], [0], [0], [1], [0, 0, 1, 1], [], []>} : vector<8x32xbf16>, vector<32x128xbf16>, vector<8x128xf32> -> vector<8x128xf32>
    %11 = arith.addf %8, %10 : vector<8x128xf32>
    %12 = vector.extract_strided_slice %11 {offsets = [0, 0], sizes = [8, 64], strides = [1, 1]} : vector<8x128xf32> to vector<8x64xf32>
    %13 = arith.negf %12 : vector<8x64xf32>
    %14 = math.exp %13 : vector<8x64xf32>
    %cst_9 = arith.constant 1.000000e+00 : f32
    %15 = vector.broadcast %cst_9 : f32 to vector<8x64xf32>
    %16 = arith.addf %15, %14 : vector<8x64xf32>
    %17 = arith.divf %15, %16 : vector<8x64xf32>
    %18 = vector.extract_strided_slice %11 {offsets = [0, 64], sizes = [8, 32], strides = [1, 1]} : vector<8x128xf32> to vector<8x32xf32>
    %19 = math.tanh %18 : vector<8x32xf32>
    %20 = vector.extract_strided_slice %11 {offsets = [0, 96], sizes = [8, 32], strides = [1, 1]} : vector<8x128xf32> to vector<8x32xf32>
    %21 = arith.negf %20 : vector<8x32xf32>
    %22 = math.exp %21 : vector<8x32xf32>
    %cst_10 = arith.constant 1.000000e+00 : f32
    %23 = vector.broadcast %cst_10 : f32 to vector<8x32xf32>
    %24 = arith.addf %23, %22 : vector<8x32xf32>
    %25 = arith.divf %23, %24 : vector<8x32xf32>
    %26 = vector.extract_strided_slice %17 {offsets = [0, 32], sizes = [8, 32], strides = [1, 1]} : vector<8x64xf32> to vector<8x32xf32>
    %27 = arith.mulf %26, %5 : vector<8x32xf32>
    %28 = vector.extract_strided_slice %17 {offsets = [0, 0], sizes = [8, 32], strides = [1, 1]} : vector<8x64xf32> to vector<8x32xf32>
    %29 = arith.mulf %28, %19 : vector<8x32xf32>
    %30 = arith.addf %27, %29 : vector<8x32xf32>
    %31 = math.tanh %30 : vector<8x32xf32>
    %32 = arith.mulf %25, %31 : vector<8x32xf32>
    %33 = arith.index_cast %c0_i32_6 : i32 to index
    %c0_11 = arith.constant 0 : index
    %c0_12 = arith.constant 0 : index
    %34 = vector.load %arg5[%33, %c0_11, %c0_12] : memref<8x8x32xf32, #tpu.memory_space<vmem>>, vector<1x8x32xf32>
    %35 = vector.shape_cast %34 : vector<1x8x32xf32> to vector<8x32xf32>
    %36 = vector.shape_cast %32 : vector<8x32xf32> to vector<1x8x32xf32>
    tpu.vector_store %arg5[%33, %c0_11, %c0_12], %36 {strides = array<i32>} : memref<8x8x32xf32, #tpu.memory_space<vmem>>, vector<1x8x32xf32>,
    %c1_i32 = arith.constant 1 : i32
    %37 = arith.index_cast %c1_i32 : i32 to index
    %c0_13 = arith.constant 0 : index
    %c0_14 = arith.constant 0 : index
    %38 = vector.load %arg1[%37, %c0_13, %c0_14] : memref<8x8x128xf32, #tpu.memory_space<vmem>>, vector<1x8x128xf32>
    %39 = vector.shape_cast %38 : vector<1x8x128xf32> to vector<8x128xf32>
    %40 = arith.truncf %32 : vector<8x32xf32> to vector<8x32xbf16>
    %cst_15 = arith.constant dense<0.000000e+00> : vector<8x128xf32>
    %41 = tpu.matmul %40, %3, %cst_15 {dimension_numbers = #tpu.dot_dimension_numbers<[1], [0], [0], [1], [0, 0, 1, 1], [], []>} : vector<8x32xbf16>, vector<32x128xbf16>, vector<8x128xf32> -> vector<8x128xf32>
    %42 = arith.addf %39, %41 : vector<8x128xf32>
    %43 = vector.extract_strided_slice %42 {offsets = [0, 0], sizes = [8, 64], strides = [1, 1]} : vector<8x128xf32> to vector<8x64xf32>
    %44 = arith.negf %43 : vector<8x64xf32>
    %45 = math.exp %44 : vector<8x64xf32>
    %cst_16 = arith.constant 1.000000e+00 : f32
    %46 = vector.broadcast %cst_16 : f32 to vector<8x64xf32>
    %47 = arith.addf %46, %45 : vector<8x64xf32>
    %48 = arith.divf %46, %47 : vector<8x64xf32>
    %49 = vector.extract_strided_slice %42 {offsets = [0, 64], sizes = [8, 32], strides = [1, 1]} : vector<8x128xf32> to vector<8x32xf32>
    %50 = math.tanh %49 : vector<8x32xf32>
    %51 = vector.extract_strided_slice %42 {offsets = [0, 96], sizes = [8, 32], strides = [1, 1]} : vector<8x128xf32> to vector<8x32xf32>
    %52 = arith.negf %51 : vector<8x32xf32>
    %53 = math.exp %52 : vector<8x32xf32>
    %cst_17 = arith.constant 1.000000e+00 : f32
    %54 = vector.broadcast %cst_17 : f32 to vector<8x32xf32>
    %55 = arith.addf %54, %53 : vector<8x32xf32>
    %56 = arith.divf %54, %55 : vector<8x32xf32>
    %57 = vector.extract_strided_slice %48 {offsets = [0, 32], sizes = [8, 32], strides = [1, 1]} : vector<8x64xf32> to vector<8x32xf32>
    %58 = arith.mulf %57, %30 : vector<8x32xf32>
    %59 = vector.extract_strided_slice %48 {offsets = [0, 0], sizes = [8, 32], strides = [1, 1]} : vector<8x64xf32> to vector<8x32xf32>
    %60 = arith.mulf %59, %50 : vector<8x32xf32>
    %61 = arith.addf %58, %60 : vector<8x32xf32>
    %62 = math.tanh %61 : vector<8x32xf32>
    %63 = arith.mulf %56, %62 : vector<8x32xf32>
    %64 = arith.index_cast %c1_i32 : i32 to index
    %c0_18 = arith.constant 0 : index
    %c0_19 = arith.constant 0 : index
    %65 = vector.load %arg5[%64, %c0_18, %c0_19] : memref<8x8x32xf32, #tpu.memory_space<vmem>>, vector<1x8x32xf32>
    %66 = vector.shape_cast %65 : vector<1x8x32xf32> to vector<8x32xf32>
    %67 = vector.shape_cast %63 : vector<8x32xf32> to vector<1x8x32xf32>
    tpu.vector_store %arg5[%64, %c0_18, %c0_19], %67 {strides = array<i32>} : memref<8x8x32xf32, #tpu.memory_space<vmem>>, vector<1x8x32xf32>,
    %c2_i32 = arith.constant 2 : i32
    %68 = arith.index_cast %c2_i32 : i32 to index
    %c0_20 = arith.constant 0 : index
    %c0_21 = arith.constant 0 : index
    %69 = vector.load %arg1[%68, %c0_20, %c0_21] : memref<8x8x128xf32, #tpu.memory_space<vmem>>, vector<1x8x128xf32>
    %70 = vector.shape_cast %69 : vector<1x8x128xf32> to vector<8x128xf32>
    %71 = arith.truncf %63 : vector<8x32xf32> to vector<8x32xbf16>
    %cst_22 = arith.constant dense<0.000000e+00> : vector<8x128xf32>
    %72 = tpu.matmul %71, %3, %cst_22 {dimension_numbers = #tpu.dot_dimension_numbers<[1], [0], [0], [1], [0, 0, 1, 1], [], []>} : vector<8x32xbf16>, vector<32x128xbf16>, vector<8x128xf32> -> vector<8x128xf32>
    %73 = arith.addf %70, %72 : vector<8x128xf32>
    %74 = vector.extract_strided_slice %73 {offsets = [0, 0], sizes = [8, 64], strides = [1, 1]} : vector<8x128xf32> to vector<8x64xf32>
    %75 = arith.negf %74 : vector<8x64xf32>
    %76 = math.exp %75 : vector<8x64xf32>
    %cst_23 = arith.constant 1.000000e+00 : f32
    %77 = vector.broadcast %cst_23 : f32 to vector<8x64xf32>
    %78 = arith.addf %77, %76 : vector<8x64xf32>
    %79 = arith.divf %77, %78 : vector<8x64xf32>
    %80 = vector.extract_strided_slice %73 {offsets = [0, 64], sizes = [8, 32], strides = [1, 1]} : vector<8x128xf32> to vector<8x32xf32>
    %81 = math.tanh %80 : vector<8x32xf32>
    %82 = vector.extract_strided_slice %73 {offsets = [0, 96], sizes = [8, 32], strides = [1, 1]} : vector<8x128xf32> to vector<8x32xf32>
    %83 = arith.negf %82 : vector<8x32xf32>
    %84 = math.exp %83 : vector<8x32xf32>
    %cst_24 = arith.constant 1.000000e+00 : f32
    %85 = vector.broadcast %cst_24 : f32 to vector<8x32xf32>
    %86 = arith.addf %85, %84 : vector<8x32xf32>
    %87 = arith.divf %85, %86 : vector<8x32xf32>
    %88 = vector.extract_strided_slice %79 {offsets = [0, 32], sizes = [8, 32], strides = [1, 1]} : vector<8x64xf32> to vector<8x32xf32>
    %89 = arith.mulf %88, %61 : vector<8x32xf32>
    %90 = vector.extract_strided_slice %79 {offsets = [0, 0], sizes = [8, 32], strides = [1, 1]} : vector<8x64xf32> to vector<8x32xf32>
    %91 = arith.mulf %90, %81 : vector<8x32xf32>
    %92 = arith.addf %89, %91 : vector<8x32xf32>
    %93 = math.tanh %92 : vector<8x32xf32>
    %94 = arith.mulf %87, %93 : vector<8x32xf32>
    %95 = arith.index_cast %c2_i32 : i32 to index
    %c0_25 = arith.constant 0 : index
    %c0_26 = arith.constant 0 : index
    %96 = vector.load %arg5[%95, %c0_25, %c0_26] : memref<8x8x32xf32, #tpu.memory_space<vmem>>, vector<1x8x32xf32>
    %97 = vector.shape_cast %96 : vector<1x8x32xf32> to vector<8x32xf32>
    %98 = vector.shape_cast %94 : vector<8x32xf32> to vector<1x8x32xf32>
    tpu.vector_store %arg5[%95, %c0_25, %c0_26], %98 {strides = array<i32>} : memref<8x8x32xf32, #tpu.memory_space<vmem>>, vector<1x8x32xf32>,
    %c3_i32 = arith.constant 3 : i32
    %99 = arith.index_cast %c3_i32 : i32 to index
    %c0_27 = arith.constant 0 : index
    %c0_28 = arith.constant 0 : index
    %100 = vector.load %arg1[%99, %c0_27, %c0_28] : memref<8x8x128xf32, #tpu.memory_space<vmem>>, vector<1x8x128xf32>
    %101 = vector.shape_cast %100 : vector<1x8x128xf32> to vector<8x128xf32>
    %102 = arith.truncf %94 : vector<8x32xf32> to vector<8x32xbf16>
    %cst_29 = arith.constant dense<0.000000e+00> : vector<8x128xf32>
    %103 = tpu.matmul %102, %3, %cst_29 {dimension_numbers = #tpu.dot_dimension_numbers<[1], [0], [0], [1], [0, 0, 1, 1], [], []>} : vector<8x32xbf16>, vector<32x128xbf16>, vector<8x128xf32> -> vector<8x128xf32>
    %104 = arith.addf %101, %103 : vector<8x128xf32>
    %105 = vector.extract_strided_slice %104 {offsets = [0, 0], sizes = [8, 64], strides = [1, 1]} : vector<8x128xf32> to vector<8x64xf32>
    %106 = arith.negf %105 : vector<8x64xf32>
    %107 = math.exp %106 : vector<8x64xf32>
    %cst_30 = arith.constant 1.000000e+00 : f32
    %108 = vector.broadcast %cst_30 : f32 to vector<8x64xf32>
    %109 = arith.addf %108, %107 : vector<8x64xf32>
    %110 = arith.divf %108, %109 : vector<8x64xf32>
    %111 = vector.extract_strided_slice %104 {offsets = [0, 64], sizes = [8, 32], strides = [1, 1]} : vector<8x128xf32> to vector<8x32xf32>
    %112 = math.tanh %111 : vector<8x32xf32>
    %113 = vector.extract_strided_slice %104 {offsets = [0, 96], sizes = [8, 32], strides = [1, 1]} : vector<8x128xf32> to vector<8x32xf32>
    %114 = arith.negf %113 : vector<8x32xf32>
    %115 = math.exp %114 : vector<8x32xf32>
    %cst_31 = arith.constant 1.000000e+00 : f32
    %116 = vector.broadcast %cst_31 : f32 to vector<8x32xf32>
    %117 = arith.addf %116, %115 : vector<8x32xf32>
    %118 = arith.divf %116, %117 : vector<8x32xf32>
    %119 = vector.extract_strided_slice %110 {offsets = [0, 32], sizes = [8, 32], strides = [1, 1]} : vector<8x64xf32> to vector<8x32xf32>
    %120 = arith.mulf %119, %92 : vector<8x32xf32>
    %121 = vector.extract_strided_slice %110 {offsets = [0, 0], sizes = [8, 32], strides = [1, 1]} : vector<8x64xf32> to vector<8x32xf32>
    %122 = arith.mulf %121, %112 : vector<8x32xf32>
    %123 = arith.addf %120, %122 : vector<8x32xf32>
    %124 = math.tanh %123 : vector<8x32xf32>
    %125 = arith.mulf %118, %124 : vector<8x32xf32>
    %126 = arith.index_cast %c3_i32 : i32 to index
    %c0_32 = arith.constant 0 : index
    %c0_33 = arith.constant 0 : index
    %127 = vector.load %arg5[%126, %c0_32, %c0_33] : memref<8x8x32xf32, #tpu.memory_space<vmem>>, vector<1x8x32xf32>
    %128 = vector.shape_cast %127 : vector<1x8x32xf32> to vector<8x32xf32>
    %129 = vector.shape_cast %125 : vector<8x32xf32> to vector<1x8x32xf32>
    tpu.vector_store %arg5[%126, %c0_32, %c0_33], %129 {strides = array<i32>} : memref<8x8x32xf32, #tpu.memory_space<vmem>>, vector<1x8x32xf32>,
    %c4_i32 = arith.constant 4 : i32
    %130 = arith.index_cast %c4_i32 : i32 to index
    %c0_34 = arith.constant 0 : index
    %c0_35 = arith.constant 0 : index
    %131 = vector.load %arg1[%130, %c0_34, %c0_35] : memref<8x8x128xf32, #tpu.memory_space<vmem>>, vector<1x8x128xf32>
    %132 = vector.shape_cast %131 : vector<1x8x128xf32> to vector<8x128xf32>
    %133 = arith.truncf %125 : vector<8x32xf32> to vector<8x32xbf16>
    %cst_36 = arith.constant dense<0.000000e+00> : vector<8x128xf32>
    %134 = tpu.matmul %133, %3, %cst_36 {dimension_numbers = #tpu.dot_dimension_numbers<[1], [0], [0], [1], [0, 0, 1, 1], [], []>} : vector<8x32xbf16>, vector<32x128xbf16>, vector<8x128xf32> -> vector<8x128xf32>
    %135 = arith.addf %132, %134 : vector<8x128xf32>
    %136 = vector.extract_strided_slice %135 {offsets = [0, 0], sizes = [8, 64], strides = [1, 1]} : vector<8x128xf32> to vector<8x64xf32>
    %137 = arith.negf %136 : vector<8x64xf32>
    %138 = math.exp %137 : vector<8x64xf32>
    %cst_37 = arith.constant 1.000000e+00 : f32
    %139 = vector.broadcast %cst_37 : f32 to vector<8x64xf32>
    %140 = arith.addf %139, %138 : vector<8x64xf32>
    %141 = arith.divf %139, %140 : vector<8x64xf32>
    %142 = vector.extract_strided_slice %135 {offsets = [0, 64], sizes = [8, 32], strides = [1, 1]} : vector<8x128xf32> to vector<8x32xf32>
    %143 = math.tanh %142 : vector<8x32xf32>
    %144 = vector.extract_strided_slice %135 {offsets = [0, 96], sizes = [8, 32], strides = [1, 1]} : vector<8x128xf32> to vector<8x32xf32>
    %145 = arith.negf %144 : vector<8x32xf32>
    %146 = math.exp %145 : vector<8x32xf32>
    %cst_38 = arith.constant 1.000000e+00 : f32
    %147 = vector.broadcast %cst_38 : f32 to vector<8x32xf32>
    %148 = arith.addf %147, %146 : vector<8x32xf32>
    %149 = arith.divf %147, %148 : vector<8x32xf32>
    %150 = vector.extract_strided_slice %141 {offsets = [0, 32], sizes = [8, 32], strides = [1, 1]} : vector<8x64xf32> to vector<8x32xf32>
    %151 = arith.mulf %150, %123 : vector<8x32xf32>
    %152 = vector.extract_strided_slice %141 {offsets = [0, 0], sizes = [8, 32], strides = [1, 1]} : vector<8x64xf32> to vector<8x32xf32>
    %153 = arith.mulf %152, %143 : vector<8x32xf32>
    %154 = arith.addf %151, %153 : vector<8x32xf32>
    %155 = math.tanh %154 : vector<8x32xf32>
    %156 = arith.mulf %149, %155 : vector<8x32xf32>
    %157 = arith.index_cast %c4_i32 : i32 to index
    %c0_39 = arith.constant 0 : index
    %c0_40 = arith.constant 0 : index
    %158 = vector.load %arg5[%157, %c0_39, %c0_40] : memref<8x8x32xf32, #tpu.memory_space<vmem>>, vector<1x8x32xf32>
    %159 = vector.shape_cast %158 : vector<1x8x32xf32> to vector<8x32xf32>
    %160 = vector.shape_cast %156 : vector<8x32xf32> to vector<1x8x32xf32>
    tpu.vector_store %arg5[%157, %c0_39, %c0_40], %160 {strides = array<i32>} : memref<8x8x32xf32, #tpu.memory_space<vmem>>, vector<1x8x32xf32>,
    %c5_i32 = arith.constant 5 : i32
    %161 = arith.index_cast %c5_i32 : i32 to index
    %c0_41 = arith.constant 0 : index
    %c0_42 = arith.constant 0 : index
    %162 = vector.load %arg1[%161, %c0_41, %c0_42] : memref<8x8x128xf32, #tpu.memory_space<vmem>>, vector<1x8x128xf32>
    %163 = vector.shape_cast %162 : vector<1x8x128xf32> to vector<8x128xf32>
    %164 = arith.truncf %156 : vector<8x32xf32> to vector<8x32xbf16>
    %cst_43 = arith.constant dense<0.000000e+00> : vector<8x128xf32>
    %165 = tpu.matmul %164, %3, %cst_43 {dimension_numbers = #tpu.dot_dimension_numbers<[1], [0], [0], [1], [0, 0, 1, 1], [], []>} : vector<8x32xbf16>, vector<32x128xbf16>, vector<8x128xf32> -> vector<8x128xf32>
    %166 = arith.addf %163, %165 : vector<8x128xf32>
    %167 = vector.extract_strided_slice %166 {offsets = [0, 0], sizes = [8, 64], strides = [1, 1]} : vector<8x128xf32> to vector<8x64xf32>
    %168 = arith.negf %167 : vector<8x64xf32>
    %169 = math.exp %168 : vector<8x64xf32>
    %cst_44 = arith.constant 1.000000e+00 : f32
    %170 = vector.broadcast %cst_44 : f32 to vector<8x64xf32>
    %171 = arith.addf %170, %169 : vector<8x64xf32>
    %172 = arith.divf %170, %171 : vector<8x64xf32>
    %173 = vector.extract_strided_slice %166 {offsets = [0, 64], sizes = [8, 32], strides = [1, 1]} : vector<8x128xf32> to vector<8x32xf32>
    %174 = math.tanh %173 : vector<8x32xf32>
    %175 = vector.extract_strided_slice %166 {offsets = [0, 96], sizes = [8, 32], strides = [1, 1]} : vector<8x128xf32> to vector<8x32xf32>
    %176 = arith.negf %175 : vector<8x32xf32>
    %177 = math.exp %176 : vector<8x32xf32>
    %cst_45 = arith.constant 1.000000e+00 : f32
    %178 = vector.broadcast %cst_45 : f32 to vector<8x32xf32>
    %179 = arith.addf %178, %177 : vector<8x32xf32>
    %180 = arith.divf %178, %179 : vector<8x32xf32>
    %181 = vector.extract_strided_slice %172 {offsets = [0, 32], sizes = [8, 32], strides = [1, 1]} : vector<8x64xf32> to vector<8x32xf32>
    %182 = arith.mulf %181, %154 : vector<8x32xf32>
    %183 = vector.extract_strided_slice %172 {offsets = [0, 0], sizes = [8, 32], strides = [1, 1]} : vector<8x64xf32> to vector<8x32xf32>
    %184 = arith.mulf %183, %174 : vector<8x32xf32>
    %185 = arith.addf %182, %184 : vector<8x32xf32>
    %186 = math.tanh %185 : vector<8x32xf32>
    %187 = arith.mulf %180, %186 : vector<8x32xf32>
    %188 = arith.index_cast %c5_i32 : i32 to index
    %c0_46 = arith.constant 0 : index
    %c0_47 = arith.constant 0 : index
    %189 = vector.load %arg5[%188, %c0_46, %c0_47] : memref<8x8x32xf32, #tpu.memory_space<vmem>>, vector<1x8x32xf32>
    %190 = vector.shape_cast %189 : vector<1x8x32xf32> to vector<8x32xf32>
    %191 = vector.shape_cast %187 : vector<8x32xf32> to vector<1x8x32xf32>
    tpu.vector_store %arg5[%188, %c0_46, %c0_47], %191 {strides = array<i32>} : memref<8x8x32xf32, #tpu.memory_space<vmem>>, vector<1x8x32xf32>,
    %c6_i32 = arith.constant 6 : i32
    %192 = arith.index_cast %c6_i32 : i32 to index
    %c0_48 = arith.constant 0 : index
    %c0_49 = arith.constant 0 : index
    %193 = vector.load %arg1[%192, %c0_48, %c0_49] : memref<8x8x128xf32, #tpu.memory_space<vmem>>, vector<1x8x128xf32>
    %194 = vector.shape_cast %193 : vector<1x8x128xf32> to vector<8x128xf32>
    %195 = arith.truncf %187 : vector<8x32xf32> to vector<8x32xbf16>
    %cst_50 = arith.constant dense<0.000000e+00> : vector<8x128xf32>
    %196 = tpu.matmul %195, %3, %cst_50 {dimension_numbers = #tpu.dot_dimension_numbers<[1], [0], [0], [1], [0, 0, 1, 1], [], []>} : vector<8x32xbf16>, vector<32x128xbf16>, vector<8x128xf32> -> vector<8x128xf32>
    %197 = arith.addf %194, %196 : vector<8x128xf32>
    %198 = vector.extract_strided_slice %197 {offsets = [0, 0], sizes = [8, 64], strides = [1, 1]} : vector<8x128xf32> to vector<8x64xf32>
    %199 = arith.negf %198 : vector<8x64xf32>
    %200 = math.exp %199 : vector<8x64xf32>
    %cst_51 = arith.constant 1.000000e+00 : f32
    %201 = vector.broadcast %cst_51 : f32 to vector<8x64xf32>
    %202 = arith.addf %201, %200 : vector<8x64xf32>
    %203 = arith.divf %201, %202 : vector<8x64xf32>
    %204 = vector.extract_strided_slice %197 {offsets = [0, 64], sizes = [8, 32], strides = [1, 1]} : vector<8x128xf32> to vector<8x32xf32>
    %205 = math.tanh %204 : vector<8x32xf32>
    %206 = vector.extract_strided_slice %197 {offsets = [0, 96], sizes = [8, 32], strides = [1, 1]} : vector<8x128xf32> to vector<8x32xf32>
    %207 = arith.negf %206 : vector<8x32xf32>
    %208 = math.exp %207 : vector<8x32xf32>
    %cst_52 = arith.constant 1.000000e+00 : f32
    %209 = vector.broadcast %cst_52 : f32 to vector<8x32xf32>
    %210 = arith.addf %209, %208 : vector<8x32xf32>
    %211 = arith.divf %209, %210 : vector<8x32xf32>
    %212 = vector.extract_strided_slice %203 {offsets = [0, 32], sizes = [8, 32], strides = [1, 1]} : vector<8x64xf32> to vector<8x32xf32>
    %213 = arith.mulf %212, %185 : vector<8x32xf32>
    %214 = vector.extract_strided_slice %203 {offsets = [0, 0], sizes = [8, 32], strides = [1, 1]} : vector<8x64xf32> to vector<8x32xf32>
    %215 = arith.mulf %214, %205 : vector<8x32xf32>
    %216 = arith.addf %213, %215 : vector<8x32xf32>
    %217 = math.tanh %216 : vector<8x32xf32>
    %218 = arith.mulf %211, %217 : vector<8x32xf32>
    %219 = arith.index_cast %c6_i32 : i32 to index
    %c0_53 = arith.constant 0 : index
    %c0_54 = arith.constant 0 : index
    %220 = vector.load %arg5[%219, %c0_53, %c0_54] : memref<8x8x32xf32, #tpu.memory_space<vmem>>, vector<1x8x32xf32>
    %221 = vector.shape_cast %220 : vector<1x8x32xf32> to vector<8x32xf32>
    %222 = vector.shape_cast %218 : vector<8x32xf32> to vector<1x8x32xf32>
    tpu.vector_store %arg5[%219, %c0_53, %c0_54], %222 {strides = array<i32>} : memref<8x8x32xf32, #tpu.memory_space<vmem>>, vector<1x8x32xf32>,
    %c7_i32 = arith.constant 7 : i32
    %223 = arith.index_cast %c7_i32 : i32 to index
    %c0_55 = arith.constant 0 : index
    %c0_56 = arith.constant 0 : index
    %224 = vector.load %arg1[%223, %c0_55, %c0_56] : memref<8x8x128xf32, #tpu.memory_space<vmem>>, vector<1x8x128xf32>
    %225 = vector.shape_cast %224 : vector<1x8x128xf32> to vector<8x128xf32>
    %226 = arith.truncf %218 : vector<8x32xf32> to vector<8x32xbf16>
    %cst_57 = arith.constant dense<0.000000e+00> : vector<8x128xf32>
    %227 = tpu.matmul %226, %3, %cst_57 {dimension_numbers = #tpu.dot_dimension_numbers<[1], [0], [0], [1], [0, 0, 1, 1], [], []>} : vector<8x32xbf16>, vector<32x128xbf16>, vector<8x128xf32> -> vector<8x128xf32>
    %228 = arith.addf %225, %227 : vector<8x128xf32>
    %229 = vector.extract_strided_slice %228 {offsets = [0, 0], sizes = [8, 64], strides = [1, 1]} : vector<8x128xf32> to vector<8x64xf32>
    %230 = arith.negf %229 : vector<8x64xf32>
    %231 = math.exp %230 : vector<8x64xf32>
    %cst_58 = arith.constant 1.000000e+00 : f32
    %232 = vector.broadcast %cst_58 : f32 to vector<8x64xf32>
    %233 = arith.addf %232, %231 : vector<8x64xf32>
    %234 = arith.divf %232, %233 : vector<8x64xf32>
    %235 = vector.extract_strided_slice %228 {offsets = [0, 64], sizes = [8, 32], strides = [1, 1]} : vector<8x128xf32> to vector<8x32xf32>
    %236 = math.tanh %235 : vector<8x32xf32>
    %237 = vector.extract_strided_slice %228 {offsets = [0, 96], sizes = [8, 32], strides = [1, 1]} : vector<8x128xf32> to vector<8x32xf32>
    %238 = arith.negf %237 : vector<8x32xf32>
    %239 = math.exp %238 : vector<8x32xf32>
    %cst_59 = arith.constant 1.000000e+00 : f32
    %240 = vector.broadcast %cst_59 : f32 to vector<8x32xf32>
    %241 = arith.addf %240, %239 : vector<8x32xf32>
    %242 = arith.divf %240, %241 : vector<8x32xf32>
    %243 = vector.extract_strided_slice %234 {offsets = [0, 32], sizes = [8, 32], strides = [1, 1]} : vector<8x64xf32> to vector<8x32xf32>
    %244 = arith.mulf %243, %216 : vector<8x32xf32>
    %245 = vector.extract_strided_slice %234 {offsets = [0, 0], sizes = [8, 32], strides = [1, 1]} : vector<8x64xf32> to vector<8x32xf32>
    %246 = arith.mulf %245, %236 : vector<8x32xf32>
    %247 = arith.addf %244, %246 : vector<8x32xf32>
    %248 = math.tanh %247 : vector<8x32xf32>
    %249 = arith.mulf %242, %248 : vector<8x32xf32>
    %250 = arith.index_cast %c7_i32 : i32 to index
    %c0_60 = arith.constant 0 : index
    %c0_61 = arith.constant 0 : index
    %251 = vector.load %arg5[%250, %c0_60, %c0_61] : memref<8x8x32xf32, #tpu.memory_space<vmem>>, vector<1x8x32xf32>
    %252 = vector.shape_cast %251 : vector<1x8x32xf32> to vector<8x32xf32>
    %253 = vector.shape_cast %249 : vector<8x32xf32> to vector<1x8x32xf32>
    tpu.vector_store %arg5[%250, %c0_60, %c0_61], %253 {strides = array<i32>} : memref<8x8x32xf32, #tpu.memory_space<vmem>>, vector<1x8x32xf32>,
    %c8_i32 = arith.constant 8 : i32
    %c0_62 = arith.constant 0 : index
    %c0_63 = arith.constant 0 : index
    %254 = vector.load %arg6[%c0_62, %c0_63] : memref<8x32xf32, #tpu.memory_space<vmem>>, vector<8x32xf32>
    tpu.vector_store %arg6[%c0_62, %c0_63], %249 {strides = array<i32>} : memref<8x32xf32, #tpu.memory_space<vmem>>, vector<8x32xf32>,
    %c0_64 = arith.constant 0 : index
    %c0_65 = arith.constant 0 : index
    %255 = vector.load %arg7[%c0_64, %c0_65] : memref<8x32xf32, #tpu.memory_space<vmem>>, vector<8x32xf32>
    tpu.vector_store %arg7[%c0_64, %c0_65], %247 {strides = array<i32>} : memref<8x32xf32, #tpu.memory_space<vmem>>, vector<8x32xf32>,
    return
  }
  func.func @transform_0(%arg0: i32) -> (i32, i32, i32) {
    %c0_i32 = arith.constant 0 : i32
    %c0_i32_0 = arith.constant 0 : i32
    %c0_i32_1 = arith.constant 0 : i32
    return %arg0, %c0_i32, %c0_i32_0 : i32, i32, i32
  }
  func.func @transform_1(%arg0: i32) -> (i32, i32) {
    %c0_i32 = arith.constant 0 : i32
    %c0_i32_0 = arith.constant 0 : i32
    %c0_i32_1 = arith.constant 0 : i32
    return %c0_i32, %c0_i32_0 : i32, i32
  }
  func.func @transform_2(%arg0: i32) -> (i32, i32) {
    %c0_i32 = arith.constant 0 : i32
    %c0_i32_0 = arith.constant 0 : i32
    %c0_i32_1 = arith.constant 0 : i32
    return %c0_i32, %c0_i32_0 : i32, i32
  }
  func.func @transform_3(%arg0: i32) -> (i32, i32) {
    %c0_i32 = arith.constant 0 : i32
    %c0_i32_0 = arith.constant 0 : i32
    %c0_i32_1 = arith.constant 0 : i32
    return %c0_i32, %c0_i32_0 : i32, i32
  }
  func.func @transform_4(%arg0: i32) -> (i32, i32, i32) {
    %c0_i32 = arith.constant 0 : i32
    %c0_i32_0 = arith.constant 0 : i32
    %c0_i32_1 = arith.constant 0 : i32
    return %arg0, %c0_i32, %c0_i32_0 : i32, i32, i32
  }
  func.func @transform_5(%arg0: i32) -> (i32, i32) {
    %c0_i32 = arith.constant 0 : i32
    %c0_i32_0 = arith.constant 0 : i32
    %c0_i32_1 = arith.constant 0 : i32
    return %c0_i32, %c0_i32_0 : i32, i32
  }
  func.func @transform_6(%arg0: i32) -> (i32, i32) {
    %c0_i32 = arith.constant 0 : i32
    %c0_i32_0 = arith.constant 0 : i32
    %c0_i32_1 = arith.constant 0 : i32
    return %c0_i32, %c0_i32_0 : i32, i32
  }
}

</mosaic_0001>

<bundles_post_ra>
// kernel: decoder_forward.2
= control target key start
LH: loop header
LB: loop body
LE: loop exit
PB: predicated region body
PF: predicated region fallthrough
CT: control target
= control target key end

     0   :  { %vm91_vm0 = vcmask 261120   ;;  %s359_s1 = inlined_call_operand.vmem [shape: bf16[32,128], index: 1, kind: input, shape index: {}]   ;;  %s360_s0 = inlined_call_operand.vmem [shape: bf16[128,32], index: 0, kind: input, shape index: {}]   ;;  %s361_s2 = inlined_call_operand.vmem [shape: f32[1,128], index: 2, kind: input, shape index: {}]   ;;  %s362_s3 = inlined_call_operand.vmem [shape: f32[128,128], index: 3, kind: output, shape index: {}]  }
   0x1   :  { %v242_v0 = vld [vmem:[%s359_s1 + $0x8] sm:$0xff]  ;;  %v241_v1 = vld [vmem:[%s359_s1] sm:$0xff]  ;;  %v235_v3 = vld [vmem:[%s360_s0 + $0x10] sm:$0xff] }
   0x2   :  { %122 = vmatpush.bf16.msra.mxu0 %v242_v0  ;;  %243 = vmatpush.bf16.msra.mxu1 %v242_v0  ;;  %v233_v2 = vld [vmem:[%s360_s0] sm:$0xff]  ;;  %v239_v5 = vld [vmem:[%s360_s0 + $0x30] sm:$0xff]  ;;  %v234_v6 = vld [vmem:[%s360_s0 + $0x8] sm:$0xff] }
   0x3   :  { %244 = vmatpush.bf16.msra.mxu2 %v242_v0  ;;  %245 = vmatpush.bf16.msra.mxu3 %v242_v0  ;;  %v237_v4 = vld [vmem:[%s360_s0 + $0x20] sm:$0xff]  ;;  %v236_v7 = vld [vmem:[%s360_s0 + $0x18] sm:$0xff]  ;;  %v238_v8 = vld [vmem:[%s360_s0 + $0x28] sm:$0xff] }
   0x4   :  { %v240_v9 = vld [vmem:[%s360_s0 + $0x38] sm:$0xff]  ;;  %v249_v10 = vld [vmem:[%s361_s2] ss:$0 sm:$0xff] }
   0x6   :  { %123 = vmatpush.bf16.msra.mxu0 %v241_v1  ;;  %246 = vmatpush.bf16.msra.mxu1 %v241_v1 }
   0x7   :  { %247 = vmatpush.bf16.msra.mxu2 %v241_v1  ;;  %248 = vmatpush.bf16.msra.mxu3 %v241_v1 }
   0x9   :  { %225 = vmatmul.msk.bf16.vlgmr.msra.gmra.mxu0 %vm91_vm0, %v233_v2  ;;  %227 = vmatmul.msk.bf16.vlgmr.msra.gmra.mxu1 %vm91_vm0, %v235_v3 }
   0xa   :  { %229 = vmatmul.msk.bf16.vlgmr.msra.gmra.mxu2 %vm91_vm0, %v237_v4  ;;  %231 = vmatmul.msk.bf16.vlgmr.msra.gmra.mxu3 %vm91_vm0, %v239_v5 }
  0x19   :  { %226 = vmatmul.msk.bf16.gmra.mxu0 %vm91_vm0, %v234_v6  ;;  %228 = vmatmul.msk.bf16.gmra.mxu1 %vm91_vm0, %v236_v7 }
  0x1a   :  { %230 = vmatmul.msk.bf16.gmra.mxu2 %vm91_vm0, %v238_v8  ;;  %232 = vmatmul.msk.bf16.gmra.mxu3 %vm91_vm0, %v240_v9 }
  0x86   :  { %v125_v11 = vpop.f32.mrf.mxu0  ;;  %v135_v12 = vpop.f32.mrf.mxu1 }
  0x87   :  { %v126_v13 = vadd.f32 %v249_v10, %v125_v11  ;;  %v136_v14 = vadd.f32 %v249_v10, %v135_v12 }
  0x89   :  { %165 = vst [vmem:[%s362_s3] sm:$0xff] %v126_v13 }
  0x8a   :  { %169 = vst [vmem:[%s362_s3 + $0x20] sm:$0xff] %v136_v14 }
  0x8d   :  { %v145_v15 = vpop.f32.mrf.mxu2  ;;  %v155_v16 = vpop.f32.mrf.mxu3 }
  0x8e   :  { %v146_v17 = vadd.f32 %v249_v10, %v145_v15  ;;  %v156_v18 = vadd.f32 %v249_v10, %v155_v16  ;;  %v127_v19 = vpop.f32.mrf.mxu0  ;;  %v137_v20 = vpop.f32.mrf.mxu1 }
  0x8f   :  { %v128_v21 = vadd.f32 %v249_v10, %v127_v19  ;;  %v138_v22 = vadd.f32 %v249_v10, %v137_v20 }
  0x90   :  { %173 = vst [vmem:[%s362_s3 + $0x40] sm:$0xff] %v146_v17 }
  0x91   :  { %177 = vst [vmem:[%s362_s3 + $0x60] sm:$0xff] %v156_v18 }
  0x92   :  { %166 = vst [vmem:[%s362_s3 + $0x8] sm:$0xff] %v128_v21 }
  0x93   :  { %170 = vst [vmem:[%s362_s3 + $0x28] sm:$0xff] %v138_v22 }
  0x95   :  { %v147_v23 = vpop.f32.mrf.mxu2  ;;  %v157_v24 = vpop.f32.mrf.mxu3 }
  0x96   :  { %v148_v25 = vadd.f32 %v249_v10, %v147_v23  ;;  %v158_v26 = vadd.f32 %v249_v10, %v157_v24  ;;  %v130_v27 = vpop.f32.mrf.mxu0  ;;  %v140_v28 = vpop.f32.mrf.mxu1 }
  0x97   :  { %v131_v29 = vadd.f32 %v249_v10, %v130_v27  ;;  %v141_v30 = vadd.f32 %v249_v10, %v140_v28 }
  0x98   :  { %174 = vst [vmem:[%s362_s3 + $0x48] sm:$0xff] %v148_v25 }
  0x99   :  { %178 = vst [vmem:[%s362_s3 + $0x68] sm:$0xff] %v158_v26 }
  0x9a   :  { %167 = vst [vmem:[%s362_s3 + $0x10] sm:$0xff] %v131_v29 }
  0x9b   :  { %171 = vst [vmem:[%s362_s3 + $0x30] sm:$0xff] %v141_v30 }
  0x9d   :  { %v150_v31 = vpop.f32.mrf.mxu2  ;;  %v160_v32 = vpop.f32.mrf.mxu3 }
  0x9e   :  { %v151_v33 = vadd.f32 %v249_v10, %v150_v31  ;;  %v161_v34 = vadd.f32 %v249_v10, %v160_v32  ;;  %v132_v35 = vpop.f32.mrf.mxu0  ;;  %v142_v36 = vpop.f32.mrf.mxu1 }
  0x9f   :  { %v133_v37 = vadd.f32 %v249_v10, %v132_v35  ;;  %v143_v38 = vadd.f32 %v249_v10, %v142_v36 }
  0xa0   :  { %175 = vst [vmem:[%s362_s3 + $0x50] sm:$0xff] %v151_v33 }
  0xa1   :  { %179 = vst [vmem:[%s362_s3 + $0x70] sm:$0xff] %v161_v34 }
  0xa2   :  { %168 = vst [vmem:[%s362_s3 + $0x18] sm:$0xff] %v133_v37 }
  0xa3   :  { %172 = vst [vmem:[%s362_s3 + $0x38] sm:$0xff] %v143_v38 }
  0xa5   :  { %v152_v39 = vpop.f32.mrf.mxu2  ;;  %v162_v40 = vpop.f32.mrf.mxu3 }
  0xa6   :  { %v153_v41 = vadd.f32 %v249_v10, %v152_v39  ;;  %v163_v42 = vadd.f32 %v249_v10, %v162_v40 }
  0xa8   :  { %176 = vst [vmem:[%s362_s3 + $0x58] sm:$0xff] %v153_v41 }
  0xa9   :  { %180 = vst [vmem:[%s362_s3 + $0x78] sm:$0xff] %v163_v42 }

// kernel: decoder_forward.3
= control target key start
LH: loop header
LB: loop body
LE: loop exit
PB: predicated region body
PF: predicated region fallthrough
CT: control target
= control target key end

     0   :  { %s1053_s21 = smov 0   ;;  %s1208_s0 = inlined_call_operand.vmem [shape: f32[16,8,128], index: 0, kind: input, shape index: {}]   ;;  %s1209_s1 = inlined_call_operand.vmem [shape: bf16[32,128], index: 1, kind: input, shape index: {}]   ;;  %s1210_s2 = inlined_call_operand.vmem [shape: f32[8,32], index: 2, kind: input, shape index: {}, may-alias: {2,3}]   ;;  %s1211_s3 = inlined_call_operand.vmem [shape: f32[8,32], index: 3, kind: input, shape index: {}, may-alias: {2,3}]   ;;  %s1212_s4 = inlined_call_operand.vmem [shape: f32[16,8,32], index: 4, kind: output, shape index: {0}]   ;;  %s1213_s5 = inlined_call_operand.vmem [shape: f32[8,32], index: 5, kind: output, shape index: {1}]   ;;  %s1214_s6 = inlined_call_operand.vmem [shape: f32[8,32], index: 6, kind: output, shape index: {2}]  }
   0x1 LB: > { %s880_s22 = sadd.s32 4294967295, %s1013_s21   ;;  %p884_p0 = scmp.ge.s32.totalorder %s1013_s21, 1  ;;  %s1013_s21 = sphi %s1053_s21, %s17_s21  }
   0x2   : > { %p208_p1 = scmp.lt.s32.totalorder %s1013_s21, 3 }
   0x4   : > { %p209_p2 = pnand %p884_p0, %p208_p1 }
   0x5   : > { %s885_s23 = sshll.u32 (!%p209_p2), %s880_s22, 3  ;;  %p889_p4 = scmp.ne.s32.totalorder (!%p209_p2), %s880_s22, 0 }
   0x6   : > { %212 = sbr.rel (%p209_p2) target bundleno = 4691 (0x1253), region = 36  ;;  %p239_p3 = scmp.lt.s32.totalorder (!%p209_p2), %s885_s23, 15 }
   0xb   : > { %s1216_s23 = smov (!%p239_p3, %s885_s23), 15  ;;  %254 = sbr.rel (%p889_p4) target bundleno = 19 (0x13), region = 40 }
   0xc   : > { %s886_s24 = sshll.u32 %s1216_s23, 3 }
   0xd   : > { %s1064_s27 = scalar_lea.vmem %s1208_s0, %s886_s24  ;;  %s1069_s30 = scalar_lea.vmem %s1212_s4, %s886_s24 }
  0x10   : > { %v255_v0 = vld [vmem:[%s1210_s2] sm:$0xff]  ;;  %vm256_vm0 = vcmask 261120  }
  0x11   : > { %v258_v1 = vld [vmem:[%s1211_s3] sm:$0xff]  ;;  %257 = vst.msk [vmem:[%s1213_s5] sm:$0xff] %vm256_vm0, %v255_v0 }
  0x12   : > { %259 = vst.msk [vmem:[%s1214_s6] sm:$0xff] %vm256_vm0, %v258_v1 }
  0x13 PF: > { %v931_v2 = vld [vmem:[%s1209_s1 + $0x8] sm:$0xff]  ;;  %v930_v3 = vld [vmem:[%s1209_s1] sm:$0xff]  ;;  %vm280_vm1 = vcmask 261120   ;;  %s1015_s22 = smov 64   ;;  %s1016_s25 = smov 32   ;;  %v904_v0 = vld [vmem:[%s1064_s27 + $0x10] sm:$0xff] }
  0x14   : > { %290 = vmatpush.bf16.msra.mxu0 %v931_v2  ;;  %359 = vmatpush.bf16.msra.mxu1 %v931_v2  ;;  %v266_v6 = vld [vmem:[%s1064_s27] sm:$0xff]  ;;  %v900_v36 = vld [vmem:[%s1064_s27 + $0x8] sm:$0xff]  ;;  %s1017_s26 = smov 96  }
  0x15   : > { %425 = vmatpush.bf16.msra.mxu2 %v931_v2  ;;  %491 = vmatpush.bf16.msra.mxu3 %v931_v2 }
  0x18   : > { %v264_v4 = vld [vmem:[%s1213_s5] sm:$0xff]  ;;  %291 = vmatpush.bf16.msra.mxu0 %v930_v3  ;;  %360 = vmatpush.bf16.msra.mxu1 %v930_v3 }
  0x19   : > { %v267_v5 = vpack.c.bf16 %v264_v4, %v264_v4  ;;  %426 = vmatpush.bf16.msra.mxu2 %v930_v3  ;;  %492 = vmatpush.bf16.msra.mxu3 %v930_v3  ;;  %v265_v11 = vld [vmem:[%s1214_s6] sm:$0xff] }
  0x1b   : > { %898 = vmatmul.msk.bf16.vlgmr.msra.gmra.mxu0 %vm280_vm1, %v267_v5 }
  0x1c   : > { %557 = vmatpush.bf16.msrb.mxu0 %v931_v2  ;;  %623 = vmatpush.bf16.msrb.mxu1 %v931_v2 }
  0x1d   : > { %689 = vmatpush.bf16.msrb.mxu2 %v931_v2  ;;  %755 = vmatpush.bf16.msrb.mxu3 %v931_v2 }
  0x20   : > { %558 = vmatpush.bf16.msrb.mxu0 %v930_v3  ;;  %624 = vmatpush.bf16.msrb.mxu1 %v930_v3 }
  0x21   : > { %690 = vmatpush.bf16.msrb.mxu2 %v930_v3  ;;  %756 = vmatpush.bf16.msrb.mxu3 %v930_v3 }
  0x98   : > { %v293_v7 = vpop.f32.mrf.mxu0 }
  0x99   : > { %v297_v8 = vadd.f32 %v293_v7, %v266_v6 }
  0x9b   : > { %943 = vtanh.f32 %v297_v8  ;;  %v899_v12 = vmul.f32 -1.442695, %v297_v8 }
  0x9d   : > { %945 = vpow2.f32 %v899_v12 }
  0xa0   : > { %v295_v9 = vpop.f32.mrf.mxu0 }
  0xa1   : > { %v944_v10 = vpop.eup %943 }
  0xa2   : > { %324 = vrot.lane.b32.xlu0 %v944_v10, %s1015_s22 }
  0xa3   : > { %v946_v13 = vpop.eup %945 }
  0xa4   : > { %v301_v14 = vadd.f32 1.0, %v946_v13 }
  0xa6   : > { %947 = vrcp.f32 %v301_v14  ;;  %v313_v20 = vand.u32 2147483648, %v301_v14  ;;  %vm307_vm3 = vweird.f32 %v301_v14  ;;  %v311_v21 = vand.u32 2147483647, %v301_v14 }
  0xa8   : > { %v314_v23 = vor.u32 1.1754944e-38, %v313_v20  ;;  %vm312_vm5 = vcmp.eq.f32.partialorder %v311_v21, 8.507059e+37 }
  0xaa   : > { %319 = vrot.lane.b32.xlu0 %v265_v11, %s1016_s25 }
  0xac   : > { %v948_v15 = vpop.eup %947 }
  0xad   : > { %v303_v16 = vmul.f32 %v948_v15, %v301_v14  ;;  %vm308_vm2 = vweird.f32 %v948_v15 }
  0xae   : > { %vm309_vm4 = vmor %vm307_vm3, %vm308_vm2 }
  0xaf   : > { %v304_v17 = vsub.f32 1.0, %v303_v16 }
  0xb1   : > { %v305_v18 = vmul.f32 %v948_v15, %v304_v17 }
  0xb3   : > { %v306_v19 = vadd.f32 %v948_v15, %v305_v18 }
  0xb5   : > { %v310_v22 = vsel %vm309_vm4, %v948_v15, %v306_v19 }
  0xb6   : > { %v315_v25 = vsel %vm312_vm5, %v314_v23, %v310_v22 }
 0x114   : > { %v325_v24 = vpop.permute.xlu0 %324 }
 0x115   : > { %v327_v26 = vmul.f32 %v325_v24, %v315_v25 }
 0x117   : > { %329 = vrot.lane.b32.xlu1 %v327_v26, %s1016_s25 }
 0x11c   : > { %v320_v27 = vpop.permute.xlu0 %319 }
 0x11d   : > { %v322_v28 = vmul.f32 %v320_v27, %v315_v25 }
 0x189   : > { %v330_v29 = vpop.permute.xlu1 %329 }
 0x18a   : > { %v332_v30 = vadd.f32 %v330_v29, %v322_v28  ;;  %v908_v28 = vld [vmem:[%s1064_s27 + $0x18] sm:$0xff] }
 0x18c   : > { %949 = vtanh.f32 %v332_v30 }
 0x192   : > { %v950_v31 = vpop.eup %949 }
 0x193   : > { %335 = vrot.lane.b32.xlu1 %v950_v31, %s1015_s22 }
 0x205   : > { %v336_v32 = vpop.permute.xlu1 %335 }
 0x206   : > { %v1101_v33 = vmul.f32 %v336_v32, %v315_v25 }
 0x208   : > { %v346_v34 = vpack.c.bf16 %v1101_v33, %v1101_v33 }
 0x20a   : > { %348 = vrot.lane.b32.xlu2 %v346_v34, %s1016_s25 }
 0x264   : > { %v349_v35 = vpop.permute.xlu2 %348 }
 0x265   : > { %901 = vmatmul.msk.bf16.vlgmr.msra.gmra.mxu1 %vm280_vm1, %v349_v35 }
 0x2e2   : > { %v362_v37 = vpop.f32.mrf.mxu1 }
 0x2e3   : > { %v366_v38 = vadd.f32 %v900_v36, %v362_v37 }
 0x2e5   : > { %951 = vtanh.f32 %v366_v38  ;;  %v902_v41 = vmul.f32 -1.442695, %v366_v38 }
 0x2e7   : > { %953 = vpow2.f32 %v902_v41 }
 0x2ea   : > { %v364_v39 = vpop.f32.mrf.mxu1 }
 0x2eb   : > { %v952_v40 = vpop.eup %951 }
 0x2ec   : > { %389 = vrot.lane.b32.xlu2 %v952_v40, %s1015_s22 }
 0x2ed   : > { %v954_v42 = vpop.eup %953 }
 0x2ee   : > { %v370_v43 = vadd.f32 1.0, %v954_v42 }
 0x2f0   : > { %955 = vrcp.f32 %v370_v43  ;;  %v382_v49 = vand.u32 2147483648, %v370_v43  ;;  %vm376_vm7 = vweird.f32 %v370_v43  ;;  %v380_v50 = vand.u32 2147483647, %v370_v43 }
 0x2f2   : > { %v383_v52 = vor.u32 1.1754944e-38, %v382_v49  ;;  %vm381_vm9 = vcmp.eq.f32.partialorder %v380_v50, 8.507059e+37 }
 0x2f6   : > { %v956_v44 = vpop.eup %955 }
 0x2f7   : > { %v372_v45 = vmul.f32 %v956_v44, %v370_v43  ;;  %vm377_vm6 = vweird.f32 %v956_v44 }
 0x2f8   : > { %vm378_vm8 = vmor %vm376_vm7, %vm377_vm6 }
 0x2f9   : > { %v373_v46 = vsub.f32 1.0, %v372_v45 }
 0x2fb   : > { %v374_v47 = vmul.f32 %v956_v44, %v373_v46 }
 0x2fd   : > { %v375_v48 = vadd.f32 %v956_v44, %v374_v47 }
 0x2ff   : > { %v379_v51 = vsel %vm378_vm8, %v956_v44, %v375_v48 }
 0x300   : > { %v384_v54 = vsel %vm381_vm9, %v383_v52, %v379_v51 }
 0x301   : > { %v387_v56 = vmul.f32 %v384_v54, %v332_v30 }
 0x346   : > { %v390_v53 = vpop.permute.xlu2 %389 }
 0x347   : > { %v392_v55 = vmul.f32 %v390_v53, %v384_v54 }
 0x349   : > { %394 = vrot.lane.b32.xlu0 %v392_v55, %s1016_s25 }
 0x3bb   : > { %v395_v57 = vpop.permute.xlu0 %394 }
 0x3bc   : > { %v397_v58 = vadd.f32 %v395_v57, %v387_v56  ;;  %v912_v57 = vld [vmem:[%s1064_s27 + $0x20] sm:$0xff] }
 0x3be   : > { %957 = vtanh.f32 %v397_v58 }
 0x3c4   : > { %v958_v59 = vpop.eup %957 }
 0x3c5   : > { %400 = vrot.lane.b32.xlu1 %v958_v59, %s1015_s22 }
 0x437   : > { %v401_v60 = vpop.permute.xlu1 %400 }
 0x438   : > { %v1111_v61 = vmul.f32 %v401_v60, %v384_v54 }
 0x43a   : > { %v412_v62 = vpack.c.bf16 %v1111_v61, %v1111_v61 }
 0x43c   : > { %414 = vrot.lane.b32.xlu2 %v412_v62, %s1016_s25 }
 0x496   : > { %v415_v63 = vpop.permute.xlu2 %414 }
 0x497   : > { %905 = vmatmul.msk.bf16.vlgmr.msra.gmra.mxu2 %vm280_vm1, %v415_v63 }
 0x51a   : > { %v428_v1 = vpop.f32.mrf.mxu2 }
 0x51b   : > { %v432_v2 = vadd.f32 %v904_v0, %v428_v1 }
 0x51d   : > { %959 = vtanh.f32 %v432_v2  ;;  %v906_v5 = vmul.f32 -1.442695, %v432_v2 }
 0x51f   : > { %961 = vpow2.f32 %v906_v5 }
 0x522   : > { %v430_v3 = vpop.f32.mrf.mxu2 }
 0x523   : > { %v960_v4 = vpop.eup %959 }
 0x524   : > { %455 = vrot.lane.b32.xlu0 %v960_v4, %s1015_s22 }
 0x525   : > { %v962_v6 = vpop.eup %961 }
 0x526   : > { %v436_v7 = vadd.f32 1.0, %v962_v6 }
 0x528   : > { %963 = vrcp.f32 %v436_v7  ;;  %v448_v13 = vand.u32 2147483648, %v436_v7  ;;  %vm442_vm11 = vweird.f32 %v436_v7  ;;  %v446_v14 = vand.u32 2147483647, %v436_v7 }
 0x52a   : > { %v449_v16 = vor.u32 1.1754944e-38, %v448_v13  ;;  %vm447_vm13 = vcmp.eq.f32.partialorder %v446_v14, 8.507059e+37 }
 0x52e   : > { %v964_v8 = vpop.eup %963 }
 0x52f   : > { %v438_v9 = vmul.f32 %v964_v8, %v436_v7  ;;  %vm443_vm10 = vweird.f32 %v964_v8 }
 0x530   : > { %vm444_vm12 = vmor %vm442_vm11, %vm443_vm10 }
 0x531   : > { %v439_v10 = vsub.f32 1.0, %v438_v9 }
 0x533   : > { %v440_v11 = vmul.f32 %v964_v8, %v439_v10 }
 0x535   : > { %v441_v12 = vadd.f32 %v964_v8, %v440_v11 }
 0x537   : > { %v445_v15 = vsel %vm444_vm12, %v964_v8, %v441_v12 }
 0x538   : > { %v450_v18 = vsel %vm447_vm13, %v449_v16, %v445_v15 }
 0x539   : > { %v453_v20 = vmul.f32 %v450_v18, %v397_v58 }
 0x596   : > { %v456_v17 = vpop.permute.xlu0 %455 }
 0x597   : > { %v458_v19 = vmul.f32 %v456_v17, %v450_v18 }
 0x599   : > { %460 = vrot.lane.b32.xlu1 %v458_v19, %s1016_s25 }
 0x60b   : > { %v461_v21 = vpop.permute.xlu1 %460 }
 0x60c   : > { %v463_v22 = vadd.f32 %v461_v21, %v453_v20 }
 0x60e   : > { %965 = vtanh.f32 %v463_v22 }
 0x614   : > { %v966_v23 = vpop.eup %965 }
 0x615   : > { %466 = vrot.lane.b32.xlu2 %v966_v23, %s1015_s22 }
 0x66f   : > { %v467_v24 = vpop.permute.xlu2 %466 }
 0x670   : > { %v1121_v25 = vmul.f32 %v467_v24, %v450_v18 }
 0x672   : > { %v478_v26 = vpack.c.bf16 %v1121_v25, %v1121_v25 }
 0x674   : > { %480 = vrot.lane.b32.xlu0 %v478_v26, %s1016_s25 }
 0x6e6   : > { %v481_v27 = vpop.permute.xlu0 %480 }
 0x6e7   : > { %909 = vmatmul.msk.bf16.vlgmr.msra.gmra.mxu3 %vm280_vm1, %v481_v27 }
 0x76a   : > { %v494_v29 = vpop.f32.mrf.mxu3 }
 0x76b   : > { %v498_v30 = vadd.f32 %v908_v28, %v494_v29 }
 0x76d   : > { %967 = vtanh.f32 %v498_v30  ;;  %v910_v34 = vmul.f32 -1.442695, %v498_v30 }
 0x76f   : > { %969 = vpow2.f32 %v910_v34 }
 0x772   : > { %v496_v31 = vpop.f32.mrf.mxu3 }
 0x773   : > { %v968_v32 = vpop.eup %967 }
 0x774   : > { %521 = vrot.lane.b32.xlu1 %v968_v32, %s1015_s22 }
 0x775   : > { %v970_v35 = vpop.eup %969 }
 0x776   : > { %v502_v36 = vadd.f32 1.0, %v970_v35 }
 0x778   : > { %971 = vrcp.f32 %v502_v36  ;;  %v514_v42 = vand.u32 2147483648, %v502_v36  ;;  %vm508_vm15 = vweird.f32 %v502_v36  ;;  %v512_v43 = vand.u32 2147483647, %v502_v36 }
 0x77a   : > { %v515_v45 = vor.u32 1.1754944e-38, %v514_v42  ;;  %vm513_vm2 = vcmp.eq.f32.partialorder %v512_v43, 8.507059e+37 }
 0x77e   : > { %v972_v37 = vpop.eup %971 }
 0x77f   : > { %v504_v38 = vmul.f32 %v972_v37, %v502_v36  ;;  %vm509_vm14 = vweird.f32 %v972_v37 }
 0x780   : > { %vm510_vm0 = vmor %vm508_vm15, %vm509_vm14 }
 0x781   : > { %v505_v39 = vsub.f32 1.0, %v504_v38 }
 0x783   : > { %v506_v40 = vmul.f32 %v972_v37, %v505_v39 }
 0x785   : > { %v507_v41 = vadd.f32 %v972_v37, %v506_v40 }
 0x787   : > { %v511_v44 = vsel %vm510_vm0, %v972_v37, %v507_v41 }
 0x788   : > { %v516_v47 = vsel %vm513_vm2, %v515_v45, %v511_v44 }
 0x789   : > { %v519_v49 = vmul.f32 %v516_v47, %v463_v22  ;;  %v916_v22 = vld [vmem:[%s1064_s27 + $0x28] sm:$0xff] }
 0x7e6   : > { %v522_v46 = vpop.permute.xlu1 %521 }
 0x7e7   : > { %v524_v48 = vmul.f32 %v522_v46, %v516_v47 }
 0x7e9   : > { %526 = vrot.lane.b32.xlu2 %v524_v48, %s1016_s25 }
 0x843   : > { %v527_v50 = vpop.permute.xlu2 %526 }
 0x844   : > { %v529_v51 = vadd.f32 %v527_v50, %v519_v49 }
 0x846   : > { %973 = vtanh.f32 %v529_v51 }
 0x84c   : > { %v974_v52 = vpop.eup %973 }
 0x84d   : > { %532 = vrot.lane.b32.xlu0 %v974_v52, %s1015_s22  ;;  %v920_v52 = vld [vmem:[%s1064_s27 + $0x30] sm:$0xff] }
 0x8bf   : > { %v533_v53 = vpop.permute.xlu0 %532 }
 0x8c0   : > { %v1131_v54 = vmul.f32 %v533_v53, %v516_v47 }
 0x8c2   : > { %v544_v55 = vpack.c.bf16 %v1131_v54, %v1131_v54 }
 0x8c4   : > { %546 = vrot.lane.b32.xlu1 %v544_v55, %s1016_s25 }
 0x936   : > { %v547_v56 = vpop.permute.xlu1 %546 }
 0x937   : > { %913 = vmatmul.msk.bf16.vlgmr.msrb.gmra.mxu0 %vm280_vm1, %v547_v56 }
 0x9b4   : > { %v560_v58 = vpop.f32.mrf.mxu0 }
 0x9b5   : > { %v564_v59 = vadd.f32 %v912_v57, %v560_v58 }
 0x9b7   : > { %975 = vtanh.f32 %v564_v59  ;;  %v914_v63 = vmul.f32 -1.442695, %v564_v59 }
 0x9b9   : > { %977 = vpow2.f32 %v914_v63 }
 0x9bc   : > { %v562_v60 = vpop.f32.mrf.mxu0 }
 0x9bd   : > { %v976_v62 = vpop.eup %975 }
 0x9be   : > { %587 = vrot.lane.b32.xlu2 %v976_v62, %s1015_s22 }
 0x9bf   : > { %v978_v0 = vpop.eup %977 }
 0x9c0   : > { %v568_v1 = vadd.f32 1.0, %v978_v0 }
 0x9c2   : > { %979 = vrcp.f32 %v568_v1  ;;  %v580_v7 = vand.u32 2147483648, %v568_v1  ;;  %vm574_vm4 = vweird.f32 %v568_v1  ;;  %v578_v8 = vand.u32 2147483647, %v568_v1 }
 0x9c4   : > { %v581_v10 = vor.u32 1.1754944e-38, %v580_v7  ;;  %vm579_vm6 = vcmp.eq.f32.partialorder %v578_v8, 8.507059e+37 }
 0x9c8   : > { %v980_v2 = vpop.eup %979 }
 0x9c9   : > { %v570_v3 = vmul.f32 %v980_v2, %v568_v1  ;;  %vm575_vm3 = vweird.f32 %v980_v2 }
 0x9ca   : > { %vm576_vm5 = vmor %vm574_vm4, %vm575_vm3 }
 0x9cb   : > { %v571_v4 = vsub.f32 1.0, %v570_v3 }
 0x9cd   : > { %v572_v5 = vmul.f32 %v980_v2, %v571_v4 }
 0x9cf   : > { %v573_v6 = vadd.f32 %v980_v2, %v572_v5 }
 0x9d1   : > { %v577_v9 = vsel %vm576_vm5, %v980_v2, %v573_v6 }
 0x9d2   : > { %v582_v12 = vsel %vm579_vm6, %v581_v10, %v577_v9 }
 0x9d3   : > { %v585_v14 = vmul.f32 %v582_v12, %v529_v51 }
 0xa18   : > { %v588_v11 = vpop.permute.xlu2 %587 }
 0xa19   : > { %v590_v13 = vmul.f32 %v588_v11, %v582_v12 }
 0xa1b   : > { %592 = vrot.lane.b32.xlu0 %v590_v13, %s1016_s25 }
 0xa8d   : > { %v593_v15 = vpop.permute.xlu0 %592 }
 0xa8e   : > { %v595_v16 = vadd.f32 %v593_v15, %v585_v14 }
 0xa90   : > { %981 = vtanh.f32 %v595_v16 }
 0xa96   : > { %v982_v17 = vpop.eup %981 }
 0xa97   : > { %598 = vrot.lane.b32.xlu1 %v982_v17, %s1015_s22 }
 0xb09   : > { %v599_v18 = vpop.permute.xlu1 %598 }
 0xb0a   : > { %v1141_v19 = vmul.f32 %v599_v18, %v582_v12  ;;  %v924_v18 = vld [vmem:[%s1064_s27 + $0x38] sm:$0xff] }
 0xb0c   : > { %v610_v20 = vpack.c.bf16 %v1141_v19, %v1141_v19 }
 0xb0e   : > { %612 = vrot.lane.b32.xlu2 %v610_v20, %s1016_s25 }
 0xb68   : > { %v613_v21 = vpop.permute.xlu2 %612 }
 0xb69   : > { %917 = vmatmul.msk.bf16.vlgmr.msrb.gmra.mxu1 %vm280_vm1, %v613_v21 }
 0xbe6   : > { %v626_v23 = vpop.f32.mrf.mxu1 }
 0xbe7   : > { %v630_v24 = vadd.f32 %v916_v22, %v626_v23 }
 0xbe9   : > { %983 = vtanh.f32 %v630_v24  ;;  %v918_v28 = vmul.f32 -1.442695, %v630_v24 }
 0xbeb   : > { %985 = vpow2.f32 %v918_v28 }
 0xbee   : > { %v628_v26 = vpop.f32.mrf.mxu1 }
 0xbef   : > { %v984_v27 = vpop.eup %983 }
 0xbf0   : > { %653 = vrot.lane.b32.xlu0 %v984_v27, %s1015_s22 }
 0xbf1   : > { %v986_v29 = vpop.eup %985 }
 0xbf2   : > { %v634_v30 = vadd.f32 1.0, %v986_v29 }
 0xbf4   : > { %987 = vrcp.f32 %v634_v30  ;;  %v646_v37 = vand.u32 2147483648, %v634_v30  ;;  %vm640_vm8 = vweird.f32 %v634_v30  ;;  %v644_v38 = vand.u32 2147483647, %v634_v30 }
 0xbf6   : > { %v647_v40 = vor.u32 1.1754944e-38, %v646_v37  ;;  %vm645_vm10 = vcmp.eq.f32.partialorder %v644_v38, 8.507059e+37 }
 0xbfa   : > { %v988_v31 = vpop.eup %987 }
 0xbfb   : > { %v636_v32 = vmul.f32 %v988_v31, %v634_v30  ;;  %vm641_vm7 = vweird.f32 %v988_v31 }
 0xbfc   : > { %vm642_vm9 = vmor %vm640_vm8, %vm641_vm7 }
 0xbfd   : > { %v637_v34 = vsub.f32 1.0, %v636_v32 }
 0xbff   : > { %v638_v35 = vmul.f32 %v988_v31, %v637_v34 }
 0xc01   : > { %v639_v36 = vadd.f32 %v988_v31, %v638_v35 }
 0xc03   : > { %v643_v39 = vsel %vm642_vm9, %v988_v31, %v639_v36 }
 0xc04   : > { %v648_v42 = vsel %vm645_vm10, %v647_v40, %v643_v39 }
 0xc05   : > { %v651_v44 = vmul.f32 %v648_v42, %v595_v16 }
 0xc62   : > { %v654_v41 = vpop.permute.xlu0 %653 }
 0xc63   : > { %v656_v43 = vmul.f32 %v654_v41, %v648_v42 }
 0xc65   : > { %658 = vrot.lane.b32.xlu1 %v656_v43, %s1016_s25 }
 0xcd7   : > { %v659_v45 = vpop.permute.xlu1 %658 }
 0xcd8   : > { %v661_v46 = vadd.f32 %v659_v45, %v651_v44 }
 0xcda   : > { %989 = vtanh.f32 %v661_v46 }
 0xce0   : > { %v990_v47 = vpop.eup %989 }
 0xce1   : > { %664 = vrot.lane.b32.xlu2 %v990_v47, %s1015_s22 }
 0xd3b   : > { %v665_v48 = vpop.permute.xlu2 %664 }
 0xd3c   : > { %v1151_v49 = vmul.f32 %v665_v48, %v648_v42 }
 0xd3e   : > { %v676_v50 = vpack.c.bf16 %v1151_v49, %v1151_v49 }
 0xd40   : > { %678 = vrot.lane.b32.xlu0 %v676_v50, %s1016_s25 }
 0xdb2   : > { %v679_v51 = vpop.permute.xlu0 %678 }
 0xdb3   : > { %921 = vmatmul.msk.bf16.vlgmr.msrb.gmra.mxu2 %vm280_vm1, %v679_v51 }
 0xe36   : > { %v692_v53 = vpop.f32.mrf.mxu2 }
 0xe37   : > { %v696_v55 = vadd.f32 %v920_v52, %v692_v53 }
 0xe39   : > { %991 = vtanh.f32 %v696_v55  ;;  %v922_v58 = vmul.f32 -1.442695, %v696_v55 }
 0xe3b   : > { %993 = vpow2.f32 %v922_v58 }
 0xe3e   : > { %v694_v56 = vpop.f32.mrf.mxu2 }
 0xe3f   : > { %v992_v57 = vpop.eup %991 }
 0xe40   : > { %719 = vrot.lane.b32.xlu1 %v992_v57, %s1015_s22 }
 0xe41   : > { %v994_v59 = vpop.eup %993 }
 0xe42   : > { %v700_v60 = vadd.f32 1.0, %v994_v59 }
 0xe44   : > { %995 = vrcp.f32 %v700_v60  ;;  %v712_v3 = vand.u32 2147483648, %v700_v60  ;;  %vm706_vm12 = vweird.f32 %v700_v60  ;;  %v710_v4 = vand.u32 2147483647, %v700_v60 }
 0xe46   : > { %v713_v6 = vor.u32 1.1754944e-38, %v712_v3  ;;  %vm711_vm14 = vcmp.eq.f32.partialorder %v710_v4, 8.507059e+37 }
 0xe4a   : > { %v996_v62 = vpop.eup %995 }
 0xe4b   : > { %v702_v63 = vmul.f32 %v996_v62, %v700_v60  ;;  %vm707_vm11 = vweird.f32 %v996_v62 }
 0xe4c   : > { %vm708_vm13 = vmor %vm706_vm12, %vm707_vm11 }
 0xe4d   : > { %v703_v0 = vsub.f32 1.0, %v702_v63 }
 0xe4f   : > { %v704_v1 = vmul.f32 %v996_v62, %v703_v0 }
 0xe51   : > { %v705_v2 = vadd.f32 %v996_v62, %v704_v1 }
 0xe53   : > { %v709_v5 = vsel %vm708_vm13, %v996_v62, %v705_v2 }
 0xe54   : > { %v714_v8 = vsel %vm711_vm14, %v713_v6, %v709_v5 }
 0xe55   : > { %v717_v10 = vmul.f32 %v714_v8, %v661_v46 }
 0xeb2   : > { %v720_v7 = vpop.permute.xlu1 %719 }
 0xeb3   : > { %v722_v9 = vmul.f32 %v720_v7, %v714_v8 }
 0xeb5   : > { %724 = vrot.lane.b32.xlu2 %v722_v9, %s1016_s25 }
 0xf0f   : > { %v725_v11 = vpop.permute.xlu2 %724 }
 0xf10   : > { %v727_v12 = vadd.f32 %v725_v11, %v717_v10 }
 0xf12   : > { %997 = vtanh.f32 %v727_v12 }
 0xf18   : > { %v998_v13 = vpop.eup %997 }
 0xf19   : > { %730 = vrot.lane.b32.xlu0 %v998_v13, %s1015_s22 }
 0xf8b   : > { %v731_v14 = vpop.permute.xlu0 %730 }
 0xf8c   : > { %v733_v15 = vmul.f32 %v731_v14, %v714_v8 }
 0xf8e   : > { %v742_v16 = vpack.c.bf16 %v733_v15, %v733_v15 }
 0xf90   : > { %744 = vrot.lane.b32.xlu1 %v742_v16, %s1016_s25 }
0x1002   : > { %v745_v17 = vpop.permute.xlu1 %744 }
0x1003   : > { %925 = vmatmul.msk.bf16.vlgmr.msrb.gmra.mxu3 %vm280_vm1, %v745_v17 }
0x1086   : > { %v758_v20 = vpop.f32.mrf.mxu3 }
0x1087   : > { %v762_v21 = vadd.f32 %v924_v18, %v758_v20 }
0x1089   : > { %999 = vtanh.f32 %v762_v21  ;;  %v926_v24 = vmul.f32 -1.442695, %v762_v21 }
0x108b   : > { %1001 = vpow2.f32 %v926_v24 }
0x108e   : > { %v760_v22 = vpop.f32.mrf.mxu3 }
0x108f   : > { %v1000_v23 = vpop.eup %999 }
0x1090   : > { %785 = vrot.lane.b32.xlu2 %v1000_v23, %s1015_s22 }
0x1091   : > { %v1002_v26 = vpop.eup %1001 }
0x1092   : > { %v766_v27 = vadd.f32 1.0, %v1002_v26 }
0x1094   : > { %1003 = vrcp.f32 %v766_v27  ;;  %v778_v34 = vand.u32 2147483648, %v766_v27  ;;  %vm772_vm0 = vweird.f32 %v766_v27 }
0x1096   : > { %v779_v35 = vor.u32 1.1754944e-38, %v778_v34 }
0x1098   : > { %340 = vrot.lane.b32.xlu2 %v1101_v33, %s1016_s25  ;;  %v776_v33 = vand.u32 2147483647, %v766_v27 }
0x109a   : > { %v1004_v28 = vpop.eup %1003  ;;  %vm777_vm3 = vcmp.eq.f32.partialorder %v776_v33, 8.507059e+37 }
0x109b   : > { %v768_v29 = vmul.f32 %v1004_v28, %v766_v27  ;;  %vm773_vm15 = vweird.f32 %v1004_v28 }
0x109c   : > { %vm774_vm2 = vmor %vm772_vm0, %vm773_vm15 }
0x109d   : > { %v769_v30 = vsub.f32 1.0, %v768_v29 }
0x109f   : > { %v770_v31 = vmul.f32 %v1004_v28, %v769_v30 }
0x10a0   : > { %537 = vrot.lane.b32.xlu2 %v1131_v54, %s1016_s25 }
0x10a1   : > { %v771_v32 = vadd.f32 %v1004_v28, %v770_v31 }
0x10a3   : > { %v775_v54 = vsel %vm774_vm2, %v1004_v28, %v771_v32 }
0x10a4   : > { %v780_v37 = vsel %vm777_vm3, %v779_v35, %v775_v54 }
0x10a5   : > { %v783_v42 = vmul.f32 %v780_v37, %v727_v12 }
0x10a8   : > { %735 = vrot.lane.b32.xlu2 %v733_v15, %s1016_s25 }
0x10ea   : > { %v786_v36 = vpop.permute.xlu2 %785 }
0x10eb   : > { %v788_v38 = vmul.f32 %v786_v36, %v780_v37 }
0x10ed   : > { %790 = vrot.lane.b32.xlu0 %v788_v38, %s1016_s25 }
0x10f2   : > { %v341_v39 = vpop.permute.xlu2 %340 }
0x10f3   : > { %343 = vst.msk [vmem:[%s1069_s30] sm:$0xff] %vm280_vm1, %v341_v39 }
0x10f5   : > { %405 = vrot.lane.b32.xlu0 %v1111_v61, %s1016_s25 }
0x10fa   : > { %v538_v40 = vpop.permute.xlu2 %537 }
0x10fb   : > { %911 = vst.msk [vmem:[%s1069_s30 + $0x18] sm:$0xff] %vm280_vm1, %v538_v40 }
0x10fd   : > { %603 = vrot.lane.b32.xlu0 %v1141_v19, %s1016_s25 }
0x1102   : > { %v736_v41 = vpop.permute.xlu2 %735 }
0x1103   : > { %923 = vst.msk [vmem:[%s1069_s30 + $0x30] sm:$0xff] %vm280_vm1, %v736_v41 }
0x115f   : > { %v791_v43 = vpop.permute.xlu0 %790 }
0x1160   : > { %v793_v44 = vadd.f32 %v791_v43, %v783_v42 }
0x1162   : > { %1005 = vtanh.f32 %v793_v44 }
0x1167   : > { %v406_v45 = vpop.permute.xlu0 %405 }
0x1168   : > { %v1006_v46 = vpop.eup %1005  ;;  %903 = vst.msk [vmem:[%s1069_s30 + $0x8] sm:$0xff] %vm280_vm1, %v406_v45 }
0x1169   : > { %796 = vrot.lane.b32.xlu1 %v1006_v46, %s1015_s22 }
0x116f   : > { %v604_v61 = vpop.permute.xlu0 %603 }
0x1170   : > { %915 = vst.msk [vmem:[%s1069_s30 + $0x20] sm:$0xff] %vm280_vm1, %v604_v61 }
0x1171   : > { %471 = vrot.lane.b32.xlu1 %v1121_v25, %s1016_s25 }
0x1179   : > { %669 = vrot.lane.b32.xlu1 %v1151_v49, %s1016_s25 }
0x1181   : > { %808 = vrot.lane.b32.xlu1 %v793_v44, %s1017_s26 }
0x11db   : > { %v797_v19 = vpop.permute.xlu1 %796 }
0x11dc   : > { %v799_v47 = vmul.f32 %v797_v19, %v780_v37 }
0x11de   : > { %801 = vrot.lane.b32.xlu0 %v799_v47, %s1016_s25 }
0x11e3   : > { %v472_v48 = vpop.permute.xlu1 %471 }
0x11e4   : > { %907 = vst.msk [vmem:[%s1069_s30 + $0x10] sm:$0xff] %vm280_vm1, %v472_v48 }
0x11eb   : > { %v670_v50 = vpop.permute.xlu1 %669 }
0x11ec   : > { %919 = vst.msk [vmem:[%s1069_s30 + $0x28] sm:$0xff] %vm280_vm1, %v670_v50 }
0x11f3   : > { %v809_v51 = vpop.permute.xlu1 %808 }
0x11f4   : > { %811 = vst.msk [vmem:[%s1214_s6] sm:$0xff] %vm280_vm1, %v809_v51 }
0x1250   : > { %v802_v25 = vpop.permute.xlu0 %801 }
0x1251   : > { %927 = vst.msk [vmem:[%s1069_s30 + $0x38] sm:$0xff] %vm280_vm1, %v802_v25 }
0x1252   : > { %806 = vst.msk [vmem:[%s1213_s5] sm:$0xff] %vm280_vm1, %v802_v25 }
0x1253 PF: > { %s17_s21 = sadd.s32 1, %s1013_s21  }
0x1254   : > { %p14_p5 = scmp.ge.s32.totalorder %s17_s21, 4  }
0x1256   :  { %16 = sbr.rel (!%p14_p5) target bundleno = 1 (0x1), region = 100 }

</bundles_post_ra>
